<compile_context>
chip_gen: v7x
topology: tpu7x:2x2x1
jax: 0.10.0
libtpu: 0.0.40
codegen_flags: <defaults>
</compile_context>

<pallas_src>
import numpy as np
import jax
import jax.numpy as jnp
from jax import lax
from jax.experimental import pallas as pl
from jax.experimental.pallas import tpu as pltpu


# ----------------------------------------------------------------------------
# Pallas kernels
# ----------------------------------------------------------------------------
def conv_relu_pool_kernel(p_ref, w_ref, b_ref, o_ref):
    """One grid step = one whole image.

    p_ref: (1, 4, Mp, Kp)   im2col patches, pre-split into the four 2x2-pool
                            parity groups g = ph*2+pw; row m = hp*Wp + wp.
    w_ref: (Kp, Cout)       conv weights, (kh, kw, Cin) flattened (zero-padded).
    b_ref: (1, Cout)        bias
    o_ref: (1, Mp, Cout)    pooled + ReLU'd output, row m = hp*Wp + wp.
    """
    w = w_ref[...]
    # conv as 4 large matmuls (one per pool-parity group); the 2x2 max-pool is
    # just an element-wise max across the 4 results — all in registers.
    acc = jnp.dot(p_ref[0, 0], w, preferred_element_type=jnp.float32)
    for g in range(1, 4):
        acc = jnp.maximum(
            acc, jnp.dot(p_ref[0, g], w, preferred_element_type=jnp.float32))
    # bias + ReLU after the max (valid: same bias for all 4, ReLU monotonic).
    o_ref[0] = jnp.maximum(acc + b_ref[...], 0.0)


def linear_kernel(x_ref, w_ref, b_ref, o_ref):
    o_ref[...] = (
        jnp.dot(x_ref[...], w_ref[...], preferred_element_type=jnp.float32)
        + b_ref[...]
    )


# ----------------------------------------------------------------------------
# Wrappers (pallas_call plumbing + glue)
# ----------------------------------------------------------------------------
def conv_relu_pool(pgroups, w2d, bias):
    """pgroups: (N, 4, Mp, Kp) f32;  w2d: (Kp, Cout);  bias: (1, Cout).

    Returns the ReLU'd, 2x2-max-pooled conv output: (N, Mp, Cout) with
    Mp = (Hout//2)*(Wout//2) and row m = hp*Wp + wp.
    """
    N, G, Mp, Kp = pgroups.shape
    Cout = w2d.shape[1]

    return pl.pallas_call(
        conv_relu_pool_kernel,
        out_shape=jax.ShapeDtypeStruct((N, Mp, Cout), jnp.float32),
        grid_spec=pltpu.PrefetchScalarGridSpec(
            num_scalar_prefetch=0,
            grid=(N,),                       # one whole image per step
            in_specs=[
                pl.BlockSpec((1, G, Mp, Kp), lambda n: (n, 0, 0, 0)),
                pl.BlockSpec((Kp, Cout), lambda n: (0, 0)),
                pl.BlockSpec((1, Cout), lambda n: (0, 0)),
            ],
            out_specs=pl.BlockSpec((1, Mp, Cout), lambda n: (n, 0, 0)),
        ),
        compiler_params=pltpu.CompilerParams(
            dimension_semantics=("parallel",)),   # v7x: 2 TCs split the batch
    )(pgroups, w2d, bias)


def linear(x, w, b):
    N, F = x.shape
    O = w.shape[1]
    return pl.pallas_call(
        linear_kernel,
        out_shape=jax.ShapeDtypeStruct((N, O), jnp.float32),
    )(x, w, b)


def im2col(x_nhwc, kh, kw, pad):
    """x: (N, H, W, C) -> (N, Hout, Wout, kh*kw*C); patch order = (kh, kw, C)."""
    xp = jnp.pad(x_nhwc, ((0, 0), (pad, pad), (pad, pad), (0, 0)))
    Hout = x_nhwc.shape[1] + 2 * pad - kh + 1
    Wout = x_nhwc.shape[2] + 2 * pad - kw + 1
    cols = [xp[:, i:i + Hout, j:j + Wout, :]
            for i in range(kh) for j in range(kw)]
    return jnp.concatenate(cols, axis=-1)


def parity_split(patches):
    """(N, Hout, Wout, K) -> (N, 4, Hp*Wp, K); group g = ph*2+pw, row = hp*Wp+wp.

    Groups the im2col patches by their 2x2 max-pool parity so the kernel can
    pool with a pure element-wise max over the 4 matmul results.
    """
    N, Hout, Wout, K = patches.shape
    Hp, Wp = Hout // 2, Wout // 2
    p = patches.reshape(N, Hp, 2, Wp, 2, K)       # (n, hp, ph, wp, pw, K)
    p = p.transpose(0, 2, 4, 1, 3, 5)             # (n, ph, pw, hp, wp, K)
    return p.reshape(N, 4, Hp * Wp, K)


def pad_k(arr, k_from, k_to, axis):
    """Zero-pad the contraction dim from k_from to k_to along `axis`."""
    if k_to == k_from:
        return arr
    pads = [(0, 0)] * arr.ndim
    pads[axis] = (0, k_to - k_from)
    return jnp.pad(arr, pads)


def cnn_forward(x_nchw, params):
    """Pallas implementation of CNN.forward.  x_nchw: (N, 3, 32, 32) f32."""
    N = x_nchw.shape[0]
    x = jnp.transpose(x_nchw, (0, 2, 3, 1))                       # NHWC

    # cnn1: Conv2d(3,16,5,p=1) + ReLU + MaxPool2
    K1, K1p = 5 * 5 * 3, 128                                      # pad 75 -> 128
    p1 = parity_split(im2col(x, 5, 5, 1))                         # (N,4,225,75)
    p1 = pad_k(p1, K1, K1p, axis=3)                               # (N,4,225,128)
    w1 = pad_k(params["w1"].reshape(K1, 16), K1, K1p, axis=0)     # (128,16)
    h1 = conv_relu_pool(p1, w1, params["b1"].reshape(1, -1))      # (N,225,16)
    h1 = h1.reshape(N, 15, 15, 16)                                # NHWC pooled

    # cnn2: Conv2d(16,32,4,p=1) + ReLU + MaxPool2   (K2 = 256, already aligned)
    p2 = parity_split(im2col(h1, 4, 4, 1))                        # (N,4,49,256)
    w2 = params["w2"].reshape(4 * 4 * 16, 32)                     # (256,32)
    h2 = conv_relu_pool(p2, w2, params["b2"].reshape(1, -1))      # (N,49,32)
    h2 = h2.reshape(N, 7, 7, 32)

    # flatten in PyTorch NCHW order (C, H, W), then Linear(1568, 10)
    feat = jnp.transpose(h2, (0, 3, 1, 2)).reshape(N, -1)         # (N,1568)
    return linear(feat, params["wo"], params["bo"].reshape(1, -1))


# ----------------------------------------------------------------------------
# Pure-JAX reference (for a correctness check of the Pallas path)
# ----------------------------------------------------------------------------
def _maxpool2_nchw(y):
    n, c, h, w = y.shape
    return y.reshape(n, c, h // 2, 2, w // 2, 2).max(axis=(3, 5))


def ref_forward(x_nchw, params):
    dn = ("NCHW", "OIHW", "NCHW")
    w1 = jnp.transpose(params["w1"], (3, 2, 0, 1))
    y = lax.conv_general_dilated(x_nchw, w1, (1, 1), ((1, 1), (1, 1)),
                                 dimension_numbers=dn)
    y = _maxpool2_nchw(jnp.maximum(y + params["b1"].reshape(1, -1, 1, 1), 0.0))
    w2 = jnp.transpose(params["w2"], (3, 2, 0, 1))
    y = lax.conv_general_dilated(y, w2, (1, 1), ((1, 1), (1, 1)),
                                 dimension_numbers=dn)
    y = _maxpool2_nchw(jnp.maximum(y + params["b2"].reshape(1, -1, 1, 1), 0.0))
    feat = y.reshape(y.shape[0], -1)
    return feat @ params["wo"] + params["bo"].reshape(1, -1)


# ----------------------------------------------------------------------------
# Main
# ----------------------------------------------------------------------------
if __name__ == "__main__":
    key = jax.random.PRNGKey(0)
    kx, k1, k2, k3, k4, k5, k6 = jax.random.split(key, 7)

    # deterministic synthetic parameters (shapes from CNN.__init__)
    params = {
        "w1": 0.1 * jax.random.normal(k1, (5, 5, 3, 16), jnp.float32),   # HWIO
        "b1": 0.1 * jax.random.normal(k2, (16,), jnp.float32),
        "w2": 0.1 * jax.random.normal(k3, (4, 4, 16, 32), jnp.float32),  # HWIO
        "b2": 0.1 * jax.random.normal(k4, (32,), jnp.float32),
        "wo": 0.05 * jax.random.normal(k5, (32 * 7 * 7, 10), jnp.float32),
        "bo": 0.05 * jax.random.normal(k6, (10,), jnp.float32),
    }

    # input (batch kept small; spatial 32x32 is fixed by Linear(32*7*7, 10))
    x = jax.random.normal(kx, (2, 3, 32, 32), jnp.float32)

    fwd = jax.jit(cnn_forward)
    out = jax.block_until_ready(fwd(x, params))
    ref = jax.block_until_ready(ref_forward(x, params))

    assert out.shape == (2, 10), out.shape
    np.testing.assert_allclose(np.asarray(out), np.asarray(ref),
                               rtol=2e-2, atol=2e-2)
    print("KERNEL_OK")
</pallas_src>

<mosaic_0001>
module attributes {stable_mosaic.version = 11 : i64} {
  func.func @conv_relu_pool_kernel(%arg0: i32, %arg1: memref<1x4x225x128xf32, #tpu.memory_space<vmem>>, %arg2: memref<128x16xf32, #tpu.memory_space<vmem>>, %arg3: memref<1x16xf32, #tpu.memory_space<vmem>>, %arg4: memref<1x225x16xf32, #tpu.memory_space<vmem>>) attributes {dimension_semantics = [#tpu.dimension_semantics<parallel>], iteration_bounds = array<i64: 2>, scalar_prefetch = 0 : i64, scratch_operands = 0 : i64, tpu.core_type = #tpu.core_type<tc>, window_params = [{transform_indices = @transform_0, window_bounds = array<i64: 1, 4, 225, 128>}, {pipeline_mode = #tpu.pipeline_mode<synchronous>, transform_indices = @transform_1, window_bounds = array<i64: 128, 16>}, {pipeline_mode = #tpu.pipeline_mode<synchronous>, transform_indices = @transform_2, window_bounds = array<i64: 1, 16>}, {transform_indices = @transform_3, window_bounds = array<i64: 1, 225, 16>}]} {
    %c0 = arith.constant 0 : index
    %c0_0 = arith.constant 0 : index
    %0 = vector.load %arg2[%c0, %c0_0] : memref<128x16xf32, #tpu.memory_space<vmem>>, vector<128x16xf32>
    %c0_1 = arith.constant 0 : index
    %c0_2 = arith.constant 0 : index
    %c0_3 = arith.constant 0 : index
    %c0_4 = arith.constant 0 : index
    %1 = vector.load %arg1[%c0_1, %c0_2, %c0_3, %c0_4] : memref<1x4x225x128xf32, #tpu.memory_space<vmem>>, vector<1x1x225x128xf32>
    %2 = vector.shape_cast %1 : vector<1x1x225x128xf32> to vector<225x128xf32>
    %cst = arith.constant dense<0.000000e+00> : vector<225x16xf32>
    %3 = tpu.matmul %2, %0, %cst {dimension_numbers = #tpu.dot_dimension_numbers<[1], [0], [0], [1], [0, 0, 1, 1], [], []>} : vector<225x128xf32>, vector<128x16xf32>, vector<225x16xf32> -> vector<225x16xf32>
    %c0_5 = arith.constant 0 : index
    %c1 = arith.constant 1 : index
    %c0_6 = arith.constant 0 : index
    %c0_7 = arith.constant 0 : index
    %4 = vector.load %arg1[%c0_5, %c1, %c0_6, %c0_7] : memref<1x4x225x128xf32, #tpu.memory_space<vmem>>, vector<1x1x225x128xf32>
    %5 = vector.shape_cast %4 : vector<1x1x225x128xf32> to vector<225x128xf32>
    %cst_8 = arith.constant dense<0.000000e+00> : vector<225x16xf32>
    %6 = tpu.matmul %5, %0, %cst_8 {dimension_numbers = #tpu.dot_dimension_numbers<[1], [0], [0], [1], [0, 0, 1, 1], [], []>} : vector<225x128xf32>, vector<128x16xf32>, vector<225x16xf32> -> vector<225x16xf32>
    %7 = arith.maximumf %3, %6 : vector<225x16xf32>
    %c0_9 = arith.constant 0 : index
    %c2 = arith.constant 2 : index
    %c0_10 = arith.constant 0 : index
    %c0_11 = arith.constant 0 : index
    %8 = vector.load %arg1[%c0_9, %c2, %c0_10, %c0_11] : memref<1x4x225x128xf32, #tpu.memory_space<vmem>>, vector<1x1x225x128xf32>
    %9 = vector.shape_cast %8 : vector<1x1x225x128xf32> to vector<225x128xf32>
    %cst_12 = arith.constant dense<0.000000e+00> : vector<225x16xf32>
    %10 = tpu.matmul %9, %0, %cst_12 {dimension_numbers = #tpu.dot_dimension_numbers<[1], [0], [0], [1], [0, 0, 1, 1], [], []>} : vector<225x128xf32>, vector<128x16xf32>, vector<225x16xf32> -> vector<225x16xf32>
    %11 = arith.maximumf %7, %10 : vector<225x16xf32>
    %c0_13 = arith.constant 0 : index
    %c3 = arith.constant 3 : index
    %c0_14 = arith.constant 0 : index
    %c0_15 = arith.constant 0 : index
    %12 = vector.load %arg1[%c0_13, %c3, %c0_14, %c0_15] : memref<1x4x225x128xf32, #tpu.memory_space<vmem>>, vector<1x1x225x128xf32>
    %13 = vector.shape_cast %12 : vector<1x1x225x128xf32> to vector<225x128xf32>
    %cst_16 = arith.constant dense<0.000000e+00> : vector<225x16xf32>
    %14 = tpu.matmul %13, %0, %cst_16 {dimension_numbers = #tpu.dot_dimension_numbers<[1], [0], [0], [1], [0, 0, 1, 1], [], []>} : vector<225x128xf32>, vector<128x16xf32>, vector<225x16xf32> -> vector<225x16xf32>
    %15 = arith.maximumf %11, %14 : vector<225x16xf32>
    %c0_17 = arith.constant 0 : index
    %c0_18 = arith.constant 0 : index
    %16 = vector.load %arg3[%c0_17, %c0_18] : memref<1x16xf32, #tpu.memory_space<vmem>>, vector<1x16xf32>
    %17 = vector.broadcast %16 : vector<1x16xf32> to vector<225x16xf32>
    %18 = arith.addf %15, %17 : vector<225x16xf32>
    %cst_19 = arith.constant 0.000000e+00 : f32
    %19 = vector.broadcast %cst_19 : f32 to vector<225x16xf32>
    %20 = arith.maximumf %18, %19 : vector<225x16xf32>
    %c0_20 = arith.constant 0 : index
    %c0_21 = arith.constant 0 : index
    %c0_22 = arith.constant 0 : index
    %21 = vector.load %arg4[%c0_20, %c0_21, %c0_22] : memref<1x225x16xf32, #tpu.memory_space<vmem>>, vector<1x225x16xf32>
    %22 = vector.shape_cast %21 : vector<1x225x16xf32> to vector<225x16xf32>
    %23 = vector.shape_cast %20 : vector<225x16xf32> to vector<1x225x16xf32>
    tpu.vector_store %arg4[%c0_20, %c0_21, %c0_22], %23 {strides = array<i32>} : memref<1x225x16xf32, #tpu.memory_space<vmem>>, vector<1x225x16xf32>,
    return
  }
  func.func @transform_0(%arg0: i32) -> (i32, i32, i32, i32) {
    %c0_i32 = arith.constant 0 : i32
    %c0_i32_0 = arith.constant 0 : i32
    %c0_i32_1 = arith.constant 0 : i32
    %c0_i32_2 = arith.constant 0 : i32
    return %arg0, %c0_i32, %c0_i32_0, %c0_i32_1 : i32, i32, i32, i32
  }
  func.func @transform_1(%arg0: i32) -> (i32, i32) {
    %c0_i32 = arith.constant 0 : i32
    %c0_i32_0 = arith.constant 0 : i32
    %c0_i32_1 = arith.constant 0 : i32
    return %c0_i32, %c0_i32_0 : i32, i32
  }
  func.func @transform_2(%arg0: i32) -> (i32, i32) {
    %c0_i32 = arith.constant 0 : i32
    %c0_i32_0 = arith.constant 0 : i32
    %c0_i32_1 = arith.constant 0 : i32
    return %c0_i32, %c0_i32_0 : i32, i32
  }
  func.func @transform_3(%arg0: i32) -> (i32, i32, i32) {
    %c0_i32 = arith.constant 0 : i32
    %c0_i32_0 = arith.constant 0 : i32
    %c0_i32_1 = arith.constant 0 : i32
    return %arg0, %c0_i32, %c0_i32_0 : i32, i32, i32
  }
}

module attributes {stable_mosaic.version = 11 : i64} {
  func.func @conv_relu_pool_kernel(%arg0: i32, %arg1: memref<1x4x49x256xf32, #tpu.memory_space<vmem>>, %arg2: memref<256x32xf32, #tpu.memory_space<vmem>>, %arg3: memref<1x32xf32, #tpu.memory_space<vmem>>, %arg4: memref<1x49x32xf32, #tpu.memory_space<vmem>>) attributes {dimension_semantics = [#tpu.dimension_semantics<parallel>], iteration_bounds = array<i64: 2>, scalar_prefetch = 0 : i64, scratch_operands = 0 : i64, tpu.core_type = #tpu.core_type<tc>, window_params = [{transform_indices = @transform_0, window_bounds = array<i64: 1, 4, 49, 256>}, {pipeline_mode = #tpu.pipeline_mode<synchronous>, transform_indices = @transform_1, window_bounds = array<i64: 256, 32>}, {pipeline_mode = #tpu.pipeline_mode<synchronous>, transform_indices = @transform_2, window_bounds = array<i64: 1, 32>}, {transform_indices = @transform_3, window_bounds = array<i64: 1, 49, 32>}]} {
    %c0 = arith.constant 0 : index
    %c0_0 = arith.constant 0 : index
    %0 = vector.load %arg2[%c0, %c0_0] : memref<256x32xf32, #tpu.memory_space<vmem>>, vector<256x32xf32>
    %c0_1 = arith.constant 0 : index
    %c0_2 = arith.constant 0 : index
    %c0_3 = arith.constant 0 : index
    %c0_4 = arith.constant 0 : index
    %1 = vector.load %arg1[%c0_1, %c0_2, %c0_3, %c0_4] : memref<1x4x49x256xf32, #tpu.memory_space<vmem>>, vector<1x1x49x256xf32>
    %2 = vector.shape_cast %1 : vector<1x1x49x256xf32> to vector<49x256xf32>
    %cst = arith.constant dense<0.000000e+00> : vector<49x32xf32>
    %3 = tpu.matmul %2, %0, %cst {dimension_numbers = #tpu.dot_dimension_numbers<[1], [0], [0], [1], [0, 0, 1, 1], [], []>} : vector<49x256xf32>, vector<256x32xf32>, vector<49x32xf32> -> vector<49x32xf32>
    %c0_5 = arith.constant 0 : index
    %c1 = arith.constant 1 : index
    %c0_6 = arith.constant 0 : index
    %c0_7 = arith.constant 0 : index
    %4 = vector.load %arg1[%c0_5, %c1, %c0_6, %c0_7] : memref<1x4x49x256xf32, #tpu.memory_space<vmem>>, vector<1x1x49x256xf32>
    %5 = vector.shape_cast %4 : vector<1x1x49x256xf32> to vector<49x256xf32>
    %cst_8 = arith.constant dense<0.000000e+00> : vector<49x32xf32>
    %6 = tpu.matmul %5, %0, %cst_8 {dimension_numbers = #tpu.dot_dimension_numbers<[1], [0], [0], [1], [0, 0, 1, 1], [], []>} : vector<49x256xf32>, vector<256x32xf32>, vector<49x32xf32> -> vector<49x32xf32>
    %7 = arith.maximumf %3, %6 : vector<49x32xf32>
    %c0_9 = arith.constant 0 : index
    %c2 = arith.constant 2 : index
    %c0_10 = arith.constant 0 : index
    %c0_11 = arith.constant 0 : index
    %8 = vector.load %arg1[%c0_9, %c2, %c0_10, %c0_11] : memref<1x4x49x256xf32, #tpu.memory_space<vmem>>, vector<1x1x49x256xf32>
    %9 = vector.shape_cast %8 : vector<1x1x49x256xf32> to vector<49x256xf32>
    %cst_12 = arith.constant dense<0.000000e+00> : vector<49x32xf32>
    %10 = tpu.matmul %9, %0, %cst_12 {dimension_numbers = #tpu.dot_dimension_numbers<[1], [0], [0], [1], [0, 0, 1, 1], [], []>} : vector<49x256xf32>, vector<256x32xf32>, vector<49x32xf32> -> vector<49x32xf32>
    %11 = arith.maximumf %7, %10 : vector<49x32xf32>
    %c0_13 = arith.constant 0 : index
    %c3 = arith.constant 3 : index
    %c0_14 = arith.constant 0 : index
    %c0_15 = arith.constant 0 : index
    %12 = vector.load %arg1[%c0_13, %c3, %c0_14, %c0_15] : memref<1x4x49x256xf32, #tpu.memory_space<vmem>>, vector<1x1x49x256xf32>
    %13 = vector.shape_cast %12 : vector<1x1x49x256xf32> to vector<49x256xf32>
    %cst_16 = arith.constant dense<0.000000e+00> : vector<49x32xf32>
    %14 = tpu.matmul %13, %0, %cst_16 {dimension_numbers = #tpu.dot_dimension_numbers<[1], [0], [0], [1], [0, 0, 1, 1], [], []>} : vector<49x256xf32>, vector<256x32xf32>, vector<49x32xf32> -> vector<49x32xf32>
    %15 = arith.maximumf %11, %14 : vector<49x32xf32>
    %c0_17 = arith.constant 0 : index
    %c0_18 = arith.constant 0 : index
    %16 = vector.load %arg3[%c0_17, %c0_18] : memref<1x32xf32, #tpu.memory_space<vmem>>, vector<1x32xf32>
    %17 = vector.broadcast %16 : vector<1x32xf32> to vector<49x32xf32>
    %18 = arith.addf %15, %17 : vector<49x32xf32>
    %cst_19 = arith.constant 0.000000e+00 : f32
    %19 = vector.broadcast %cst_19 : f32 to vector<49x32xf32>
    %20 = arith.maximumf %18, %19 : vector<49x32xf32>
    %c0_20 = arith.constant 0 : index
    %c0_21 = arith.constant 0 : index
    %c0_22 = arith.constant 0 : index
    %21 = vector.load %arg4[%c0_20, %c0_21, %c0_22] : memref<1x49x32xf32, #tpu.memory_space<vmem>>, vector<1x49x32xf32>
    %22 = vector.shape_cast %21 : vector<1x49x32xf32> to vector<49x32xf32>
    %23 = vector.shape_cast %20 : vector<49x32xf32> to vector<1x49x32xf32>
    tpu.vector_store %arg4[%c0_20, %c0_21, %c0_22], %23 {strides = array<i32>} : memref<1x49x32xf32, #tpu.memory_space<vmem>>, vector<1x49x32xf32>,
    return
  }
  func.func @transform_0(%arg0: i32) -> (i32, i32, i32, i32) {
    %c0_i32 = arith.constant 0 : i32
    %c0_i32_0 = arith.constant 0 : i32
    %c0_i32_1 = arith.constant 0 : i32
    %c0_i32_2 = arith.constant 0 : i32
    return %arg0, %c0_i32, %c0_i32_0, %c0_i32_1 : i32, i32, i32, i32
  }
  func.func @transform_1(%arg0: i32) -> (i32, i32) {
    %c0_i32 = arith.constant 0 : i32
    %c0_i32_0 = arith.constant 0 : i32
    %c0_i32_1 = arith.constant 0 : i32
    return %c0_i32, %c0_i32_0 : i32, i32
  }
  func.func @transform_2(%arg0: i32) -> (i32, i32) {
    %c0_i32 = arith.constant 0 : i32
    %c0_i32_0 = arith.constant 0 : i32
    %c0_i32_1 = arith.constant 0 : i32
    return %c0_i32, %c0_i32_0 : i32, i32
  }
  func.func @transform_3(%arg0: i32) -> (i32, i32, i32) {
    %c0_i32 = arith.constant 0 : i32
    %c0_i32_0 = arith.constant 0 : i32
    %c0_i32_1 = arith.constant 0 : i32
    return %arg0, %c0_i32, %c0_i32_0 : i32, i32, i32
  }
}

module attributes {stable_mosaic.version = 11 : i64} {
  func.func @linear_kernel(%arg0: memref<2x1568xf32, #tpu.memory_space<vmem>>, %arg1: memref<1568x10xf32, #tpu.memory_space<vmem>>, %arg2: memref<1x10xf32, #tpu.memory_space<vmem>>, %arg3: memref<2x10xf32, #tpu.memory_space<vmem>>) attributes {dimension_semantics = [], scalar_prefetch = 0 : i64, scratch_operands = 0 : i64, tpu.core_type = #tpu.core_type<tc>} {
    %c0 = arith.constant 0 : index
    %c0_0 = arith.constant 0 : index
    %0 = vector.load %arg0[%c0, %c0_0] : memref<2x1568xf32, #tpu.memory_space<vmem>>, vector<2x1568xf32>
    %c0_1 = arith.constant 0 : index
    %c0_2 = arith.constant 0 : index
    %1 = vector.load %arg1[%c0_1, %c0_2] : memref<1568x10xf32, #tpu.memory_space<vmem>>, vector<1568x10xf32>
    %cst = arith.constant dense<0.000000e+00> : vector<2x10xf32>
    %2 = tpu.matmul %0, %1, %cst {dimension_numbers = #tpu.dot_dimension_numbers<[1], [0], [0], [1], [0, 0, 1, 1], [], []>} : vector<2x1568xf32>, vector<1568x10xf32>, vector<2x10xf32> -> vector<2x10xf32>
    %c0_3 = arith.constant 0 : index
    %c0_4 = arith.constant 0 : index
    %3 = vector.load %arg2[%c0_3, %c0_4] : memref<1x10xf32, #tpu.memory_space<vmem>>, vector<1x10xf32>
    %4 = vector.broadcast %3 : vector<1x10xf32> to vector<2x10xf32>
    %5 = arith.addf %2, %4 : vector<2x10xf32>
    %c0_5 = arith.constant 0 : index
    %c0_6 = arith.constant 0 : index
    %6 = vector.load %arg3[%c0_5, %c0_6] : memref<2x10xf32, #tpu.memory_space<vmem>>, vector<2x10xf32>
    tpu.vector_store %arg3[%c0_5, %c0_6], %5 {strides = array<i32>} : memref<2x10xf32, #tpu.memory_space<vmem>>, vector<2x10xf32>,
    return
  }
}

</mosaic_0001>

<bundles_post_ra>
// kernel: cnn_forward.3
= control target key start
LH: loop header
LB: loop body
LE: loop exit
PB: predicated region body
PF: predicated region fallthrough
CT: control target
= control target key end

     0   :  { %s2277_s12 = smov 0   ;;  %s3134_s0 = inlined_call_operand.vmem [shape: f32[2,4,225,128], index: 0, kind: input, shape index: {}]   ;;  %s3135_s1 = inlined_call_operand.vmem [shape: f32[128,16], index: 1, kind: input, shape index: {}]   ;;  %s3136_s2 = inlined_call_operand.vmem [shape: f32[1,16], index: 2, kind: input, shape index: {}]   ;;  %s3137_s3 = inlined_call_operand.vmem [shape: f32[2,225,16], index: 3, kind: output, shape index: {}]  }
   0x1 LB: > { %s1384_s13 = sadd.s32 4294967295, %s2252_s12   ;;  %p1388_p0 = scmp.ge.s32.totalorder %s2252_s12, 1  ;;  %s2252_s12 = sphi %s2277_s12, %s13_s12  }
   0x2   : > { %p137_p1 = scmp.lt.s32.totalorder %s2252_s12, 3 }
   0x4   : > { %p138_p2 = pnand %p1388_p0, %p137_p1 }
   0x6   : > { %141 = sbr.rel (%p138_p2) target bundleno = 496 (0x1f0), region = 32 }
   0xd   : > { %v171_v0 = vld [vmem:[%s3135_s1] sm:$0xff]  ;;  %v172_v1 = vld [vmem:[%s3135_s1 + $0x8] sm:$0xff]  ;;  %v173_v2 = vld [vmem:[%s3135_s1 + $0x10] sm:$0xff]  ;;  %v2254_v3 = vmov 0.0|0.0   ;;  %vm2255_vm0 = vmmov 0   ;;  %v2256_v6 = vmov 0.0  }
   0xe   : > { %2137 = vmatprep.subr.bf16.mxu0 %v2254_v3  ;;  %v2295_v4 = vpack.c.bf16 %v172_v1, %v171_v0  ;;  %2161 = vmatprep.subr.bf16.mxu1 %v2254_v3  ;;  %v174_v5 = vld [vmem:[%s3135_s1 + $0x18] sm:$0xff]  ;;  %v175_v8 = vld [vmem:[%s3135_s1 + $0x20] sm:$0xff]  ;;  %v176_v9 = vld [vmem:[%s3135_s1 + $0x28] sm:$0xff]  ;;  %p161_p3 = scmp.lt.s32.totalorder %s1384_s13, 1  ;;  %vm1298_vm1 = vcmask 130048   ;;  %vm1327_vm2 = vcmask 122880  }
   0xf   : > { %1693 = vmatprep.mubr.msk.f32.mxu0 %vm2255_vm0, %v2256_v6  ;;  %1812 = vmatprep.mubr.msk.f32.mxu1 %vm2255_vm0, %v2256_v6  ;;  %v2307_v7 = vpack.c.bf16 %v174_v5, %v173_v2  ;;  %v2319_v10 = vpack.c.bf16 %v176_v9, %v175_v8  ;;  %v177_v11 = vld [vmem:[%s3135_s1 + $0x30] sm:$0xff]  ;;  %v178_v12 = vld [vmem:[%s3135_s1 + $0x38] sm:$0xff]  ;;  %v179_v14 = vld [vmem:[%s3135_s1 + $0x40] sm:$0xff] }
  0x10   : > { %2139 = vmatpush3.bf16.msra.mxu0 %v2295_v4  ;;  %2163 = vmatpush3.bf16.msra.mxu1 %v2295_v4  ;;  %v2331_v13 = vpack.c.bf16 %v178_v12, %v177_v11  ;;  %v180_v15 = vld [vmem:[%s3135_s1 + $0x48] sm:$0xff]  ;;  %v181_v17 = vld [vmem:[%s3135_s1 + $0x50] sm:$0xff]  ;;  %v182_v18 = vld [vmem:[%s3135_s1 + $0x58] sm:$0xff]  ;;  %s3192_s13 = smov (!%p161_p3, %s1384_s13), 1 }
  0x11   : > { %2140 = vmatprep.subr.bf16.mxu0 %v2254_v3  ;;  %2164 = vmatprep.subr.bf16.mxu1 %v2254_v3  ;;  %v2343_v16 = vpack.c.bf16 %v180_v15, %v179_v14  ;;  %v2357_v19 = vpack.c.bf16 %v182_v18, %v181_v17  ;;  %v183_v20 = vld [vmem:[%s3135_s1 + $0x60] sm:$0xff]  ;;  %v184_v21 = vld [vmem:[%s3135_s1 + $0x68] sm:$0xff]  ;;  %v185_v23 = vld [vmem:[%s3135_s1 + $0x70] sm:$0xff]  ;;  %s2233_s21 = smul.u32 928, %s3192_s13 }
  0x12   : > { %v2373_v22 = vpack.c.bf16 %v184_v21, %v183_v20  ;;  %v186_v24 = vld [vmem:[%s3135_s1 + $0x78] sm:$0xff]  ;;  %s2234_s25 = smul.u32 232, %s3192_s13 }
  0x13   : > { %v2386_v25 = vpack.c.bf16 %v186_v24, %v185_v23  ;;  %s2393_s24 = scalar_lea.vmem %s3134_s0, %s2233_s21 }
  0x14   : > { %2142 = vmatpush3.bf16.msra.mxu0 %v2307_v7  ;;  %2166 = vmatpush3.bf16.msra.mxu1 %v2307_v7  ;;  %v187_v26 = vld [vmem:[%s2393_s24] sm:$0xff]  ;;  %v1391_v27 = vld [vmem:[%s2393_s24 + $0xe8] sm:$0xff]  ;;  %v1392_v29 = vld [vmem:[%s2393_s24 + $0xf0] sm:$0xff]  ;;  %s2963_s13 = scalar_lea.vmem %s3137_s3, %s2234_s25 }
  0x15   : > { %2143 = vmatprep.subr.bf16.mxu0 %v2254_v3  ;;  %2167 = vmatprep.subr.bf16.mxu1 %v2254_v3  ;;  %v188_v28 = vld [vmem:[%s2393_s24 + $0x8] sm:$0xff]  ;;  %v189_v30 = vld [vmem:[%s2393_s24 + $0x10] sm:$0xff]  ;;  %v1393_v31 = vld [vmem:[%s2393_s24 + $0xf8] sm:$0xff] }
  0x16   : > { %v190_v32 = vld [vmem:[%s2393_s24 + $0x18] sm:$0xff]  ;;  %v1394_v33 = vld [vmem:[%s2393_s24 + $0x100] sm:$0xff]  ;;  %v1395_v35 = vld [vmem:[%s2393_s24 + $0x108] sm:$0xff] }
  0x17   : > { %v191_v34 = vld [vmem:[%s2393_s24 + $0x20] sm:$0xff]  ;;  %v192_v36 = vld [vmem:[%s2393_s24 + $0x28] sm:$0xff]  ;;  %v1396_v37 = vld [vmem:[%s2393_s24 + $0x110] sm:$0xff] }
  0x18   : > { %2145 = vmatpush3.bf16.msra.mxu0 %v2319_v10  ;;  %2169 = vmatpush3.bf16.msra.mxu1 %v2319_v10  ;;  %v193_v38 = vld [vmem:[%s2393_s24 + $0x30] sm:$0xff]  ;;  %v1397_v39 = vld [vmem:[%s2393_s24 + $0x118] sm:$0xff]  ;;  %v1398_v41 = vld [vmem:[%s2393_s24 + $0x120] sm:$0xff] }
  0x19   : > { %2146 = vmatprep.subr.bf16.mxu0 %v2254_v3  ;;  %2170 = vmatprep.subr.bf16.mxu1 %v2254_v3  ;;  %v194_v40 = vld [vmem:[%s2393_s24 + $0x38] sm:$0xff]  ;;  %v195_v42 = vld [vmem:[%s2393_s24 + $0x40] sm:$0xff]  ;;  %v1399_v43 = vld [vmem:[%s2393_s24 + $0x128] sm:$0xff] }
  0x1a   : > { %v196_v44 = vld [vmem:[%s2393_s24 + $0x48] sm:$0xff]  ;;  %v1400_v45 = vld [vmem:[%s2393_s24 + $0x130] sm:$0xff]  ;;  %v1401_v47 = vld [vmem:[%s2393_s24 + $0x138] sm:$0xff] }
  0x1b   : > { %v197_v46 = vld [vmem:[%s2393_s24 + $0x50] sm:$0xff]  ;;  %v198_v48 = vld [vmem:[%s2393_s24 + $0x58] sm:$0xff]  ;;  %v1402_v49 = vld [vmem:[%s2393_s24 + $0x140] sm:$0xff] }
  0x1c   : > { %2148 = vmatpush3.bf16.msra.mxu0 %v2331_v13  ;;  %2172 = vmatpush3.bf16.msra.mxu1 %v2331_v13  ;;  %v199_v50 = vld [vmem:[%s2393_s24 + $0x60] sm:$0xff]  ;;  %v1403_v51 = vld [vmem:[%s2393_s24 + $0x148] sm:$0xff]  ;;  %v1404_v53 = vld [vmem:[%s2393_s24 + $0x150] sm:$0xff] }
  0x1d   : > { %2149 = vmatprep.subr.bf16.mxu0 %v2254_v3  ;;  %2173 = vmatprep.subr.bf16.mxu1 %v2254_v3  ;;  %v200_v52 = vld [vmem:[%s2393_s24 + $0x68] sm:$0xff]  ;;  %v201_v54 = vld [vmem:[%s2393_s24 + $0x70] sm:$0xff]  ;;  %v1405_v55 = vld [vmem:[%s2393_s24 + $0x158] sm:$0xff] }
  0x1e   : > { %v202_v56 = vld [vmem:[%s2393_s24 + $0x78] sm:$0xff]  ;;  %v1406_v57 = vld [vmem:[%s2393_s24 + $0x160] sm:$0xff]  ;;  %v1407_v59 = vld [vmem:[%s2393_s24 + $0x168] sm:$0xff] }
  0x1f   : > { %v203_v58 = vld [vmem:[%s2393_s24 + $0x80] sm:$0xff]  ;;  %v204_v60 = vld [vmem:[%s2393_s24 + $0x88] sm:$0xff]  ;;  %v1408_v61 = vld [vmem:[%s2393_s24 + $0x170] sm:$0xff] }
  0x20   : > { %2151 = vmatpush3.bf16.msra.mxu0 %v2343_v16  ;;  %2175 = vmatpush3.bf16.msra.mxu1 %v2343_v16  ;;  %v205_v62 = vld [vmem:[%s2393_s24 + $0x90] sm:$0xff]  ;;  %v1409_v63 = vld [vmem:[%s2393_s24 + $0x178] sm:$0xff]  ;;  %v1410_v1 = vld [vmem:[%s2393_s24 + $0x180] sm:$0xff] }
  0x21   : > { %2152 = vmatprep.subr.bf16.mxu0 %v2254_v3  ;;  %2176 = vmatprep.subr.bf16.mxu1 %v2254_v3  ;;  %v206_v0 = vld [vmem:[%s2393_s24 + $0x98] sm:$0xff]  ;;  %v207_v2 = vld [vmem:[%s2393_s24 + $0xa0] sm:$0xff]  ;;  %v1412_v5 = vld [vmem:[%s2393_s24 + $0x190] sm:$0xff] }
  0x22   : > { %v1413_v8 = vld [vmem:[%s2393_s24 + $0x198] sm:$0xff]  ;;  %v211_v11 = vld [vmem:[%s2393_s24 + $0xc0] sm:$0xff]  ;;  %v1415_v12 = vld [vmem:[%s2393_s24 + $0x1a8] sm:$0xff] }
  0x23   : > { %v210_v9 = vld [vmem:[%s2393_s24 + $0xb8] sm:$0xff]  ;;  %v1416_v14 = vld [vmem:[%s2393_s24 + $0x1b0] sm:$0xff]  ;;  %v1418_v18 = vld [vmem:[%s2393_s24 + $0x1c0] sm:$0xff] }
  0x24   : > { %2154 = vmatpush3.bf16.msra.mxu0 %v2357_v19  ;;  %2178 = vmatpush3.bf16.msra.mxu1 %v2357_v19  ;;  %v213_v15 = vld [vmem:[%s2393_s24 + $0xd0] sm:$0xff]  ;;  %v214_v17 = vld [vmem:[%s2393_s24 + $0xd8] sm:$0xff]  ;;  %v1419_v20 = vld [vmem:[%s2393_s24 + $0x1c8] sm:$0x1] }
  0x25   : > { %2155 = vmatprep.subr.bf16.mxu0 %v2254_v3  ;;  %2179 = vmatprep.subr.bf16.mxu1 %v2254_v3  ;;  %v1420_v21 = vld [vmem:[%s2393_s24 + $0x1d0] sm:$0xff]  ;;  %v1421_v23 = vld [vmem:[%s2393_s24 + $0x1d8] sm:$0xff]  ;;  %v1450_v24 = vld [vmem:[%s2393_s24 + $0x2c0] sm:$0xff] }
  0x28   : > { %2157 = vmatpush3.bf16.msra.mxu0 %v2373_v22  ;;  %2181 = vmatpush3.bf16.msra.mxu1 %v2373_v22 }
  0x29   : > { %2158 = vmatprep.subr.bf16.mxu0 %v2254_v3  ;;  %2182 = vmatprep.subr.bf16.mxu1 %v2254_v3 }
  0x2c   : > { %2160 = vmatpush3.bf16.msra.mxu0 %v2386_v25  ;;  %2184 = vmatpush3.bf16.msra.mxu1 %v2386_v25 }
  0x2d   : > { %2185 = vmatprep.subr.bf16.mxu0 %v2254_v3  ;;  %2209 = vmatprep.subr.bf16.mxu1 %v2254_v3 }
  0x2f   : > { %1694 = vmatmul.mubr.f32.vlgmr.msra.gmra.mrb[0].mxu0 %v187_v26  ;;  %1813 = vmatmul.mubr.f32.vlgmr.msra.gmra.mrb[0].mxu1 %v1391_v27  ;;  %v1451_v26 = vld [vmem:[%s2393_s24 + $0x2c8] sm:$0xff] }
  0x30   : > { %2187 = vmatpush3.bf16.msra.mxu0 %v2295_v4  ;;  %1696 = vmatprep.mubr.msk.f32.mxu0 %vm2255_vm0, %v2256_v6  ;;  %v1423_v27 = vld [vmem:[%s2393_s24 + $0x1e8] sm:$0xff] }
  0x31   : > { %2211 = vmatpush3.bf16.msra.mxu1 %v2295_v4  ;;  %1815 = vmatprep.mubr.msk.f32.mxu1 %vm2255_vm0, %v2256_v6  ;;  %v208_v4 = vld [vmem:[%s2393_s24 + $0xa8] sm:$0xff] }
  0x32   : > { %2188 = vmatprep.subr.bf16.mxu0 %v2254_v3  ;;  %2212 = vmatprep.subr.bf16.mxu1 %v2254_v3 }
  0x33   : > { %1697 = vmatmul.mubr.f32.gmra.mrb[2].mxu0 %v188_v28  ;;  %1816 = vmatmul.mubr.f32.gmra.mrb[2].mxu1 %v1392_v29  ;;  %v1452_v28 = vld [vmem:[%s2393_s24 + $0x2d0] sm:$0xff] }
  0x34   : > { %1699 = vmatprep.mubr.msk.f32.mxu0 %vm2255_vm0, %v2256_v6  ;;  %1818 = vmatprep.mubr.msk.f32.mxu1 %vm2255_vm0, %v2256_v6  ;;  %v1424_v29 = vld [vmem:[%s2393_s24 + $0x1f0] sm:$0xff] }
  0x35   : > { %2190 = vmatpush3.bf16.msra.mxu0 %v2307_v7  ;;  %2214 = vmatpush3.bf16.msra.mxu1 %v2307_v7  ;;  %v209_v7 = vld [vmem:[%s2393_s24 + $0xb0] sm:$0xff] }
  0x36   : > { %2191 = vmatprep.subr.bf16.mxu0 %v2254_v3  ;;  %2215 = vmatprep.subr.bf16.mxu1 %v2254_v3 }
  0x37   : > { %1700 = vmatmul.mubr.f32.gmra.mrb[4].mxu0 %v189_v30  ;;  %1819 = vmatmul.mubr.f32.gmra.mrb[4].mxu1 %v1393_v31  ;;  %v1453_v30 = vld [vmem:[%s2393_s24 + $0x2d8] sm:$0xff] }
  0x38   : > { %1702 = vmatprep.mubr.msk.f32.mxu0 %vm2255_vm0, %v2256_v6  ;;  %1821 = vmatprep.mubr.msk.f32.mxu1 %vm2255_vm0, %v2256_v6  ;;  %v1425_v31 = vld [vmem:[%s2393_s24 + $0x1f8] sm:$0xff] }
  0x39   : > { %2193 = vmatpush3.bf16.msra.mxu0 %v2319_v10  ;;  %2217 = vmatpush3.bf16.msra.mxu1 %v2319_v10  ;;  %v1414_v10 = vld [vmem:[%s2393_s24 + $0x1a0] sm:$0xff] }
  0x3a   : > { %2194 = vmatprep.subr.bf16.mxu0 %v2254_v3  ;;  %2218 = vmatprep.subr.bf16.mxu1 %v2254_v3 }
  0x3b   : > { %1703 = vmatmul.mubr.f32.gmra.mrb[6].mxu0 %v190_v32  ;;  %1822 = vmatmul.mubr.f32.gmra.mrb[6].mxu1 %v1394_v33  ;;  %v1454_v32 = vld [vmem:[%s2393_s24 + $0x2e0] sm:$0xff] }
  0x3c   : > { %1705 = vmatprep.mubr.msk.f32.mxu0 %vm2255_vm0, %v2256_v6  ;;  %1824 = vmatprep.mubr.msk.f32.mxu1 %vm2255_vm0, %v2256_v6  ;;  %v1426_v33 = vld [vmem:[%s2393_s24 + $0x200] sm:$0xff] }
  0x3d   : > { %2196 = vmatpush3.bf16.msra.mxu0 %v2331_v13  ;;  %2220 = vmatpush3.bf16.msra.mxu1 %v2331_v13  ;;  %v212_v13 = vld [vmem:[%s2393_s24 + $0xc8] sm:$0xff] }
  0x3e   : > { %2197 = vmatprep.subr.bf16.mxu0 %v2254_v3  ;;  %2221 = vmatprep.subr.bf16.mxu1 %v2254_v3 }
  0x3f   : > { %1706 = vmatmul.mubr.f32.gmra.mrb[8].mxu0 %v191_v34  ;;  %1825 = vmatmul.mubr.f32.gmra.mrb[8].mxu1 %v1395_v35  ;;  %v1455_v34 = vld [vmem:[%s2393_s24 + $0x2e8] sm:$0xff] }
  0x40   : > { %1708 = vmatprep.mubr.msk.f32.mxu0 %vm2255_vm0, %v2256_v6  ;;  %1827 = vmatprep.mubr.msk.f32.mxu1 %vm2255_vm0, %v2256_v6  ;;  %v1427_v35 = vld [vmem:[%s2393_s24 + $0x208] sm:$0xff] }
  0x41   : > { %2199 = vmatpush3.bf16.msra.mxu0 %v2343_v16  ;;  %2223 = vmatpush3.bf16.msra.mxu1 %v2343_v16  ;;  %v1417_v16 = vld [vmem:[%s2393_s24 + $0x1b8] sm:$0xff] }
  0x42   : > { %2200 = vmatprep.subr.bf16.mxu0 %v2254_v3  ;;  %2224 = vmatprep.subr.bf16.mxu1 %v2254_v3 }
  0x43   : > { %1709 = vmatmul.mubr.f32.gmra.mrb[10].mxu0 %v192_v36  ;;  %1828 = vmatmul.mubr.f32.gmra.mrb[10].mxu1 %v1396_v37  ;;  %v1456_v36 = vld [vmem:[%s2393_s24 + $0x2f0] sm:$0xff] }
  0x44   : > { %1711 = vmatprep.mubr.msk.f32.mxu0 %vm2255_vm0, %v2256_v6  ;;  %1830 = vmatprep.mubr.msk.f32.mxu1 %vm2255_vm0, %v2256_v6  ;;  %v1428_v37 = vld [vmem:[%s2393_s24 + $0x210] sm:$0xff] }
  0x45   : > { %2202 = vmatpush3.bf16.msra.mxu0 %v2357_v19  ;;  %2226 = vmatpush3.bf16.msra.mxu1 %v2357_v19  ;;  %v215_v19 = vld [vmem:[%s2393_s24 + $0xe0] sm:$0x1] }
  0x46   : > { %2203 = vmatprep.subr.bf16.mxu0 %v2254_v3  ;;  %2227 = vmatprep.subr.bf16.mxu1 %v2254_v3 }
  0x47   : > { %1712 = vmatmul.mubr.f32.gmra.mrb[12].mxu0 %v193_v38  ;;  %1831 = vmatmul.mubr.f32.gmra.mrb[12].mxu1 %v1397_v39  ;;  %v1457_v38 = vld [vmem:[%s2393_s24 + $0x2f8] sm:$0xff] }
  0x48   : > { %1714 = vmatprep.mubr.msk.f32.mxu0 %vm2255_vm0, %v2256_v6  ;;  %1833 = vmatprep.mubr.msk.f32.mxu1 %vm2255_vm0, %v2256_v6  ;;  %v1429_v39 = vld [vmem:[%s2393_s24 + $0x218] sm:$0xff] }
  0x49   : > { %2205 = vmatpush3.bf16.msra.mxu0 %v2373_v22  ;;  %2229 = vmatpush3.bf16.msra.mxu1 %v2373_v22  ;;  %v1449_v22 = vld [vmem:[%s2393_s24 + $0x2b8] sm:$0xff] }
  0x4a   : > { %2206 = vmatprep.subr.bf16.mxu0 %v2254_v3  ;;  %2230 = vmatprep.subr.bf16.mxu1 %v2254_v3  ;;  %v1411_v3 = vld [vmem:[%s2393_s24 + $0x188] sm:$0xff] }
  0x4b   : > { %1715 = vmatmul.mubr.f32.gmra.mrb[14].mxu0 %v194_v40  ;;  %1834 = vmatmul.mubr.f32.gmra.mrb[14].mxu1 %v1398_v41  ;;  %v1458_v40 = vld [vmem:[%s2393_s24 + $0x300] sm:$0xff] }
  0x4c   : > { %1717 = vmatprep.mubr.msk.f32.mxu0 %vm2255_vm0, %v2256_v6  ;;  %1836 = vmatprep.mubr.msk.f32.mxu1 %vm2255_vm0, %v2256_v6  ;;  %v1430_v41 = vld [vmem:[%s2393_s24 + $0x220] sm:$0xff] }
  0x4d   : > { %2208 = vmatpush3.bf16.msra.mxu0 %v2386_v25  ;;  %2232 = vmatpush3.bf16.msra.mxu1 %v2386_v25  ;;  %v1422_v25 = vld [vmem:[%s2393_s24 + $0x1e0] sm:$0xff] }
  0x4f   : > { %1718 = vmatmul.mubr.f32.gmra.mrb[16].mxu0 %v195_v42  ;;  %1837 = vmatmul.mubr.f32.gmra.mrb[16].mxu1 %v1399_v43  ;;  %v1459_v42 = vld [vmem:[%s2393_s24 + $0x308] sm:$0xff] }
  0x50   : > { %1720 = vmatprep.mubr.msk.f32.mxu0 %vm2255_vm0, %v2256_v6  ;;  %1839 = vmatprep.mubr.msk.f32.mxu1 %vm2255_vm0, %v2256_v6  ;;  %v1431_v43 = vld [vmem:[%s2393_s24 + $0x228] sm:$0xff] }
  0x53   : > { %1721 = vmatmul.mubr.f32.gmra.mrb[18].mxu0 %v196_v44  ;;  %1840 = vmatmul.mubr.f32.gmra.mrb[18].mxu1 %v1400_v45  ;;  %v1460_v44 = vld [vmem:[%s2393_s24 + $0x310] sm:$0xff] }
  0x54   : > { %1723 = vmatprep.mubr.msk.f32.mxu0 %vm2255_vm0, %v2256_v6  ;;  %1842 = vmatprep.mubr.msk.f32.mxu1 %vm2255_vm0, %v2256_v6  ;;  %v1432_v45 = vld [vmem:[%s2393_s24 + $0x230] sm:$0xff] }
  0x57   : > { %1724 = vmatmul.mubr.f32.gmra.mrb[20].mxu0 %v197_v46  ;;  %1843 = vmatmul.mubr.f32.gmra.mrb[20].mxu1 %v1401_v47  ;;  %v1461_v46 = vld [vmem:[%s2393_s24 + $0x318] sm:$0xff] }
  0x58   : > { %1726 = vmatprep.mubr.msk.f32.mxu0 %vm2255_vm0, %v2256_v6  ;;  %1845 = vmatprep.mubr.msk.f32.mxu1 %vm2255_vm0, %v2256_v6  ;;  %v1433_v47 = vld [vmem:[%s2393_s24 + $0x238] sm:$0xff] }
  0x5b   : > { %1727 = vmatmul.mubr.f32.gmra.mrb[22].mxu0 %v198_v48  ;;  %1846 = vmatmul.mubr.f32.gmra.mrb[22].mxu1 %v1402_v49  ;;  %v1462_v48 = vld [vmem:[%s2393_s24 + $0x320] sm:$0xff] }
  0x5c   : > { %1729 = vmatprep.mubr.msk.f32.mxu0 %vm2255_vm0, %v2256_v6  ;;  %1848 = vmatprep.mubr.msk.f32.mxu1 %vm2255_vm0, %v2256_v6  ;;  %v1434_v49 = vld [vmem:[%s2393_s24 + $0x240] sm:$0xff] }
  0x5f   : > { %1730 = vmatmul.mubr.f32.gmra.mrb[24].mxu0 %v199_v50  ;;  %1849 = vmatmul.mubr.f32.gmra.mrb[24].mxu1 %v1403_v51  ;;  %v1463_v50 = vld [vmem:[%s2393_s24 + $0x328] sm:$0xff] }
  0x60   : > { %1732 = vmatprep.mubr.msk.f32.mxu0 %vm2255_vm0, %v2256_v6  ;;  %1851 = vmatprep.mubr.msk.f32.mxu1 %vm2255_vm0, %v2256_v6  ;;  %v1435_v51 = vld [vmem:[%s2393_s24 + $0x248] sm:$0xff] }
  0x63   : > { %1733 = vmatmul.mubr.f32.gmra.mrb[26].mxu0 %v200_v52  ;;  %1852 = vmatmul.mubr.f32.gmra.mrb[26].mxu1 %v1404_v53  ;;  %v1464_v52 = vld [vmem:[%s2393_s24 + $0x330] sm:$0xff] }
  0x64   : > { %1735 = vmatprep.mubr.msk.f32.mxu0 %vm2255_vm0, %v2256_v6  ;;  %1854 = vmatprep.mubr.msk.f32.mxu1 %vm2255_vm0, %v2256_v6  ;;  %v1436_v53 = vld [vmem:[%s2393_s24 + $0x250] sm:$0xff] }
  0x67   : > { %1736 = vmatmul.mubr.f32.gmra.mrb[28].mxu0 %v201_v54  ;;  %1855 = vmatmul.mubr.f32.gmra.mrb[28].mxu1 %v1405_v55  ;;  %v1465_v54 = vld [vmem:[%s2393_s24 + $0x338] sm:$0xff] }
  0x68   : > { %1738 = vmatprep.mubr.msk.f32.mxu0 %vm2255_vm0, %v2256_v6  ;;  %1857 = vmatprep.mubr.msk.f32.mxu1 %vm2255_vm0, %v2256_v6  ;;  %v1437_v55 = vld [vmem:[%s2393_s24 + $0x258] sm:$0xff] }
  0x6b   : > { %1739 = vmatmul.mubr.f32.gmra.mrb[30].mxu0 %v202_v56  ;;  %1858 = vmatmul.mubr.f32.gmra.mrb[30].mxu1 %v1406_v57  ;;  %v1466_v56 = vld [vmem:[%s2393_s24 + $0x340] sm:$0xff] }
  0x6c   : > { %1741 = vmatprep.mubr.msk.f32.mxu0 %vm2255_vm0, %v2256_v6  ;;  %1860 = vmatprep.mubr.msk.f32.mxu1 %vm2255_vm0, %v2256_v6  ;;  %v1438_v57 = vld [vmem:[%s2393_s24 + $0x260] sm:$0xff] }
  0x6f   : > { %1742 = vmatmul.mubr.f32.gmra.mrb[32].mxu0 %v203_v58  ;;  %1861 = vmatmul.mubr.f32.gmra.mrb[32].mxu1 %v1407_v59  ;;  %v1467_v58 = vld [vmem:[%s2393_s24 + $0x348] sm:$0xff] }
  0x70   : > { %1744 = vmatprep.mubr.msk.f32.mxu0 %vm2255_vm0, %v2256_v6  ;;  %1863 = vmatprep.mubr.msk.f32.mxu1 %vm2255_vm0, %v2256_v6  ;;  %v1439_v59 = vld [vmem:[%s2393_s24 + $0x268] sm:$0xff] }
  0x73   : > { %1745 = vmatmul.mubr.f32.gmra.mrb[34].mxu0 %v204_v60  ;;  %1864 = vmatmul.mubr.f32.gmra.mrb[34].mxu1 %v1408_v61  ;;  %v1468_v60 = vld [vmem:[%s2393_s24 + $0x350] sm:$0xff] }
  0x74   : > { %1747 = vmatprep.mubr.msk.f32.mxu0 %vm2255_vm0, %v2256_v6  ;;  %1866 = vmatprep.mubr.msk.f32.mxu1 %vm2255_vm0, %v2256_v6  ;;  %v1440_v61 = vld [vmem:[%s2393_s24 + $0x270] sm:$0xff] }
  0x77   : > { %1748 = vmatmul.mubr.f32.gmra.mrb[36].mxu0 %v205_v62  ;;  %1867 = vmatmul.mubr.f32.gmra.mrb[36].mxu1 %v1409_v63  ;;  %v1469_v62 = vld [vmem:[%s2393_s24 + $0x358] sm:$0xff] }
  0x78   : > { %1750 = vmatprep.mubr.msk.f32.mxu0 %vm2255_vm0, %v2256_v6  ;;  %1869 = vmatprep.mubr.msk.f32.mxu1 %vm2255_vm0, %v2256_v6  ;;  %v1441_v63 = vld [vmem:[%s2393_s24 + $0x278] sm:$0xff] }
  0x7b   : > { %1751 = vmatmul.mubr.f32.gmra.mrb[38].mxu0 %v206_v0  ;;  %1870 = vmatmul.mubr.f32.gmra.mrb[38].mxu1 %v1410_v1  ;;  %v1470_v0 = vld [vmem:[%s2393_s24 + $0x360] sm:$0xff] }
  0x7c   : > { %1753 = vmatprep.mubr.msk.f32.mxu0 %vm2255_vm0, %v2256_v6  ;;  %1872 = vmatprep.mubr.msk.f32.mxu1 %vm2255_vm0, %v2256_v6  ;;  %v1442_v1 = vld [vmem:[%s2393_s24 + $0x280] sm:$0xff] }
  0x7f   : > { %1754 = vmatmul.mubr.f32.gmra.mrb[40].mxu0 %v207_v2  ;;  %1873 = vmatmul.mubr.f32.gmra.mrb[40].mxu1 %v1411_v3  ;;  %v1471_v2 = vld [vmem:[%s2393_s24 + $0x368] sm:$0xff] }
  0x80   : > { %1756 = vmatprep.mubr.msk.f32.mxu0 %vm2255_vm0, %v2256_v6  ;;  %1875 = vmatprep.mubr.msk.f32.mxu1 %vm2255_vm0, %v2256_v6  ;;  %v1443_v3 = vld [vmem:[%s2393_s24 + $0x288] sm:$0xff] }
  0x83   : > { %1757 = vmatmul.mubr.f32.gmra.mrb[42].mxu0 %v208_v4  ;;  %1876 = vmatmul.mubr.f32.gmra.mrb[42].mxu1 %v1412_v5  ;;  %v1472_v4 = vld [vmem:[%s2393_s24 + $0x370] sm:$0xff] }
  0x84   : > { %1759 = vmatprep.mubr.msk.f32.mxu0 %vm2255_vm0, %v2256_v6  ;;  %1878 = vmatprep.mubr.msk.f32.mxu1 %vm2255_vm0, %v2256_v6  ;;  %v1444_v5 = vld [vmem:[%s2393_s24 + $0x290] sm:$0xff] }
  0x87   : > { %1760 = vmatmul.mubr.f32.gmra.mrb[44].mxu0 %v209_v7  ;;  %1879 = vmatmul.mubr.f32.gmra.mrb[44].mxu1 %v1413_v8  ;;  %v1473_v7 = vld [vmem:[%s2393_s24 + $0x378] sm:$0xff] }
  0x88   : > { %1762 = vmatprep.mubr.msk.f32.mxu0 %vm2255_vm0, %v2256_v6  ;;  %1881 = vmatprep.mubr.msk.f32.mxu1 %vm2255_vm0, %v2256_v6 }
  0x8b   : > { %1763 = vmatmul.mubr.f32.gmra.mrb[46].mxu0 %v210_v9  ;;  %1882 = vmatmul.mubr.f32.gmra.mrb[46].mxu1 %v1414_v10 }
  0x8c   : > { %1765 = vmatprep.mubr.msk.f32.mxu0 %vm2255_vm0, %v2256_v6  ;;  %1884 = vmatprep.mubr.msk.f32.mxu1 %vm2255_vm0, %v2256_v6 }
  0x8f   : > { %1766 = vmatmul.mubr.f32.gmra.mrb[48].mxu0 %v211_v11  ;;  %1885 = vmatmul.mubr.f32.gmra.mrb[48].mxu1 %v1415_v12 }
  0x90   : > { %1768 = vmatprep.mubr.msk.f32.mxu0 %vm2255_vm0, %v2256_v6  ;;  %1887 = vmatprep.mubr.msk.f32.mxu1 %vm2255_vm0, %v2256_v6 }
  0x93   : > { %1769 = vmatmul.mubr.f32.gmra.mrb[50].mxu0 %v212_v13  ;;  %1888 = vmatmul.mubr.f32.gmra.mrb[50].mxu1 %v1416_v14  ;;  %v1445_v13 = vld [vmem:[%s2393_s24 + $0x298] sm:$0xff]  ;;  %v1474_v14 = vld [vmem:[%s2393_s24 + $0x380] sm:$0xff] }
  0x94   : > { %1771 = vmatprep.mubr.msk.f32.mxu0 %vm2255_vm0, %v2256_v6  ;;  %1890 = vmatprep.mubr.msk.f32.mxu1 %vm2255_vm0, %v2256_v6 }
  0x97   : > { %1772 = vmatmul.mubr.f32.gmra.mrb[52].mxu0 %v213_v15  ;;  %1891 = vmatmul.mubr.f32.gmra.mrb[52].mxu1 %v1417_v16 }
  0x98   : > { %1774 = vmatprep.mubr.msk.f32.mxu0 %vm2255_vm0, %v2256_v6  ;;  %1893 = vmatprep.mubr.msk.f32.mxu1 %vm2255_vm0, %v2256_v6 }
  0x9b   : > { %1775 = vmatmul.mubr.f32.gmra.mrb[54].mxu0 %v214_v17  ;;  %1894 = vmatmul.mubr.f32.gmra.mrb[54].mxu1 %v1418_v18 }
  0x9c   : > { %1777 = vmatprep.mubr.msk.f32.mxu0 %vm2255_vm0, %v2256_v6  ;;  %1896 = vmatprep.mubr.msk.f32.mxu1 %vm2255_vm0, %v2256_v6 }
  0x9f   : > { %1778 = vmatmul.mubr.f32.gmra.mrb[56].mxu0 %v215_v19  ;;  %1897 = vmatmul.mubr.f32.gmra.mrb[56].mxu1 %v1419_v20  ;;  %v1446_v20 = vld [vmem:[%s2393_s24 + $0x2a0] sm:$0xff] }
  0xa0   : > { %1931 = vmatprep.mubr.msk.f32.mxu0 %vm2255_vm0, %v2256_v6  ;;  %2050 = vmatprep.mubr.msk.f32.mxu1 %vm2255_vm0, %v2256_v6 }
  0xa3   : > { %1932 = vmatmul.mubr.f32.vlgmr.msra.gmra.mrb[58].mxu0 %v1420_v21  ;;  %2051 = vmatmul.mubr.f32.vlgmr.msra.gmra.mrb[58].mxu1 %v1449_v22  ;;  %v1475_v21 = vld [vmem:[%s2393_s24 + $0x388] sm:$0xff] }
  0xa4   : > { %1934 = vmatprep.mubr.msk.f32.mxu0 %vm2255_vm0, %v2256_v6  ;;  %2053 = vmatprep.mubr.msk.f32.mxu1 %vm2255_vm0, %v2256_v6 }
  0xa7   : > { %1935 = vmatmul.mubr.f32.gmra.mrb[60].mxu0 %v1421_v23  ;;  %2054 = vmatmul.mubr.f32.gmra.mrb[60].mxu1 %v1450_v24 }
  0xa8   : > { %1937 = vmatprep.mubr.msk.f32.mxu0 %vm2255_vm0, %v2256_v6  ;;  %2056 = vmatprep.mubr.msk.f32.mxu1 %vm2255_vm0, %v2256_v6 }
  0xab   : > { %1938 = vmatmul.mubr.f32.gmra.mrb[62].mxu0 %v1422_v25  ;;  %2057 = vmatmul.mubr.f32.gmra.mrb[62].mxu1 %v1451_v26 }
  0xac   : > { %1940 = vmatprep.mubr.msk.f32.mxu0 %vm2255_vm0, %v2256_v6  ;;  %2059 = vmatprep.mubr.msk.f32.mxu1 %vm2255_vm0, %v2256_v6 }
  0xaf   : > { %1941 = vmatmul.mubr.f32.gmra.mrb[64].mxu0 %v1423_v27  ;;  %2060 = vmatmul.mubr.f32.gmra.mrb[64].mxu1 %v1452_v28  ;;  %v1447_v27 = vld [vmem:[%s2393_s24 + $0x2a8] sm:$0xff]  ;;  %v1476_v28 = vld [vmem:[%s2393_s24 + $0x390] sm:$0xff] }
  0xb0   : > { %1943 = vmatprep.mubr.msk.f32.mxu0 %vm2255_vm0, %v2256_v6  ;;  %2062 = vmatprep.mubr.msk.f32.mxu1 %vm2255_vm0, %v2256_v6 }
  0xb3   : > { %1944 = vmatmul.mubr.f32.gmra.mrb[66].mxu0 %v1424_v29  ;;  %2063 = vmatmul.mubr.f32.gmra.mrb[66].mxu1 %v1453_v30 }
  0xb4   : > { %1946 = vmatprep.mubr.msk.f32.mxu0 %vm2255_vm0, %v2256_v6  ;;  %2065 = vmatprep.mubr.msk.f32.mxu1 %vm2255_vm0, %v2256_v6 }
  0xb7   : > { %1947 = vmatmul.mubr.f32.gmra.mrb[68].mxu0 %v1425_v31  ;;  %2066 = vmatmul.mubr.f32.gmra.mrb[68].mxu1 %v1454_v32 }
  0xb8   : > { %1949 = vmatprep.mubr.msk.f32.mxu0 %vm2255_vm0, %v2256_v6  ;;  %2068 = vmatprep.mubr.msk.f32.mxu1 %vm2255_vm0, %v2256_v6 }
  0xbb   : > { %1950 = vmatmul.mubr.f32.gmra.mrb[70].mxu0 %v1426_v33  ;;  %2069 = vmatmul.mubr.f32.gmra.mrb[70].mxu1 %v1455_v34  ;;  %v1448_v34 = vld [vmem:[%s2393_s24 + $0x2b0] sm:$0x1] }
  0xbc   : > { %1952 = vmatprep.mubr.msk.f32.mxu0 %vm2255_vm0, %v2256_v6  ;;  %2071 = vmatprep.mubr.msk.f32.mxu1 %vm2255_vm0, %v2256_v6 }
  0xbf   : > { %1953 = vmatmul.mubr.f32.gmra.mrb[72].mxu0 %v1427_v35  ;;  %2072 = vmatmul.mubr.f32.gmra.mrb[72].mxu1 %v1456_v36  ;;  %v1477_v35 = vld [vmem:[%s2393_s24 + $0x398] sm:$0x1] }
  0xc0   : > { %1955 = vmatprep.mubr.msk.f32.mxu0 %vm2255_vm0, %v2256_v6  ;;  %2074 = vmatprep.mubr.msk.f32.mxu1 %vm2255_vm0, %v2256_v6 }
  0xc3   : > { %1956 = vmatmul.mubr.f32.gmra.mrb[74].mxu0 %v1428_v37  ;;  %2075 = vmatmul.mubr.f32.gmra.mrb[74].mxu1 %v1457_v38 }
  0xc4   : > { %1958 = vmatprep.mubr.msk.f32.mxu0 %vm2255_vm0, %v2256_v6  ;;  %2077 = vmatprep.mubr.msk.f32.mxu1 %vm2255_vm0, %v2256_v6 }
  0xc7   : > { %1959 = vmatmul.mubr.f32.gmra.mrb[76].mxu0 %v1429_v39  ;;  %2078 = vmatmul.mubr.f32.gmra.mrb[76].mxu1 %v1458_v40 }
  0xc8   : > { %1961 = vmatprep.mubr.msk.f32.mxu0 %vm2255_vm0, %v2256_v6  ;;  %2080 = vmatprep.mubr.msk.f32.mxu1 %vm2255_vm0, %v2256_v6 }
  0xcb   : > { %1962 = vmatmul.mubr.f32.gmra.mrb[78].mxu0 %v1430_v41  ;;  %2081 = vmatmul.mubr.f32.gmra.mrb[78].mxu1 %v1459_v42 }
  0xcc   : > { %1964 = vmatprep.mubr.msk.f32.mxu0 %vm2255_vm0, %v2256_v6  ;;  %2083 = vmatprep.mubr.msk.f32.mxu1 %vm2255_vm0, %v2256_v6 }
  0xcf   : > { %1965 = vmatmul.mubr.f32.gmra.mrb[80].mxu0 %v1431_v43  ;;  %2084 = vmatmul.mubr.f32.gmra.mrb[80].mxu1 %v1460_v44 }
  0xd0   : > { %1967 = vmatprep.mubr.msk.f32.mxu0 %vm2255_vm0, %v2256_v6  ;;  %2086 = vmatprep.mubr.msk.f32.mxu1 %vm2255_vm0, %v2256_v6 }
  0xd3   : > { %1968 = vmatmul.mubr.f32.gmra.mrb[82].mxu0 %v1432_v45  ;;  %2087 = vmatmul.mubr.f32.gmra.mrb[82].mxu1 %v1461_v46 }
  0xd4   : > { %1970 = vmatprep.mubr.msk.f32.mxu0 %vm2255_vm0, %v2256_v6  ;;  %2089 = vmatprep.mubr.msk.f32.mxu1 %vm2255_vm0, %v2256_v6 }
  0xd7   : > { %1971 = vmatmul.mubr.f32.gmra.mrb[84].mxu0 %v1433_v47  ;;  %2090 = vmatmul.mubr.f32.gmra.mrb[84].mxu1 %v1462_v48 }
  0xd8   : > { %1973 = vmatprep.mubr.msk.f32.mxu0 %vm2255_vm0, %v2256_v6  ;;  %2092 = vmatprep.mubr.msk.f32.mxu1 %vm2255_vm0, %v2256_v6 }
  0xdb   : > { %1974 = vmatmul.mubr.f32.gmra.mrb[86].mxu0 %v1434_v49  ;;  %2093 = vmatmul.mubr.f32.gmra.mrb[86].mxu1 %v1463_v50 }
  0xdc   : > { %1976 = vmatprep.mubr.msk.f32.mxu0 %vm2255_vm0, %v2256_v6  ;;  %2095 = vmatprep.mubr.msk.f32.mxu1 %vm2255_vm0, %v2256_v6 }
  0xdf   : > { %1977 = vmatmul.mubr.f32.gmra.mrb[88].mxu0 %v1435_v51  ;;  %2096 = vmatmul.mubr.f32.gmra.mrb[88].mxu1 %v1464_v52 }
  0xe0   : > { %1979 = vmatprep.mubr.msk.f32.mxu0 %vm2255_vm0, %v2256_v6  ;;  %2098 = vmatprep.mubr.msk.f32.mxu1 %vm2255_vm0, %v2256_v6 }
  0xe3   : > { %1980 = vmatmul.mubr.f32.gmra.mrb[90].mxu0 %v1436_v53  ;;  %2099 = vmatmul.mubr.f32.gmra.mrb[90].mxu1 %v1465_v54 }
  0xe4   : > { %1982 = vmatprep.mubr.msk.f32.mxu0 %vm2255_vm0, %v2256_v6  ;;  %2101 = vmatprep.mubr.msk.f32.mxu1 %vm2255_vm0, %v2256_v6 }
  0xe7   : > { %1983 = vmatmul.mubr.f32.gmra.mrb[92].mxu0 %v1437_v55  ;;  %2102 = vmatmul.mubr.f32.gmra.mrb[92].mxu1 %v1466_v56 }
  0xe8   : > { %1985 = vmatprep.mubr.msk.f32.mxu0 %vm2255_vm0, %v2256_v6  ;;  %2104 = vmatprep.mubr.msk.f32.mxu1 %vm2255_vm0, %v2256_v6 }
  0xeb   : > { %1986 = vmatmul.mubr.f32.gmra.mrb[94].mxu0 %v1438_v57  ;;  %2105 = vmatmul.mubr.f32.gmra.mrb[94].mxu1 %v1467_v58 }
  0xec   : > { %1988 = vmatprep.mubr.msk.f32.mxu0 %vm2255_vm0, %v2256_v6  ;;  %2107 = vmatprep.mubr.msk.f32.mxu1 %vm2255_vm0, %v2256_v6 }
  0xef   : > { %1989 = vmatmul.mubr.f32.gmra.mrb[96].mxu0 %v1439_v59  ;;  %2108 = vmatmul.mubr.f32.gmra.mrb[96].mxu1 %v1468_v60 }
  0xf0   : > { %1991 = vmatprep.mubr.msk.f32.mxu0 %vm2255_vm0, %v2256_v6  ;;  %2110 = vmatprep.mubr.msk.f32.mxu1 %vm2255_vm0, %v2256_v6 }
  0xf3   : > { %1992 = vmatmul.mubr.f32.gmra.mrb[98].mxu0 %v1440_v61  ;;  %2111 = vmatmul.mubr.f32.gmra.mrb[98].mxu1 %v1469_v62 }
  0xf4   : > { %1994 = vmatprep.mubr.msk.f32.mxu0 %vm2255_vm0, %v2256_v6  ;;  %2113 = vmatprep.mubr.msk.f32.mxu1 %vm2255_vm0, %v2256_v6 }
  0xf7   : > { %1995 = vmatmul.mubr.f32.gmra.mrb[100].mxu0 %v1441_v63  ;;  %2114 = vmatmul.mubr.f32.gmra.mrb[100].mxu1 %v1470_v0 }
  0xf8   : > { %1997 = vmatprep.mubr.msk.f32.mxu0 %vm2255_vm0, %v2256_v6  ;;  %2116 = vmatprep.mubr.msk.f32.mxu1 %vm2255_vm0, %v2256_v6 }
  0xfb   : > { %1998 = vmatmul.mubr.f32.gmra.mrb[102].mxu0 %v1442_v1  ;;  %2117 = vmatmul.mubr.f32.gmra.mrb[102].mxu1 %v1471_v2 }
  0xfc   : > { %2000 = vmatprep.mubr.msk.f32.mxu0 %vm2255_vm0, %v2256_v6  ;;  %2119 = vmatprep.mubr.msk.f32.mxu1 %vm2255_vm0, %v2256_v6 }
  0xff   : > { %2001 = vmatmul.mubr.f32.gmra.mrb[104].mxu0 %v1443_v3  ;;  %2120 = vmatmul.mubr.f32.gmra.mrb[104].mxu1 %v1472_v4 }
 0x100   : > { %2003 = vmatprep.mubr.msk.f32.mxu0 %vm2255_vm0, %v2256_v6  ;;  %2122 = vmatprep.mubr.msk.f32.mxu1 %vm2255_vm0, %v2256_v6 }
 0x102   : > { %v2749_v8 = vpop.f32.mrb[0].mxu0  ;;  %v2751_v9 = vpop.f32.mrb[0].mxu1 }
 0x103   : > { %v1695_v10 = vpop.f32.mrb[1].mxu0  ;;  %2004 = vmatmul.mubr.f32.gmra.mrb[106].mxu0 %v1444_v5  ;;  %v1814_v12 = vpop.f32.mrb[1].mxu1  ;;  %2123 = vmatmul.mubr.f32.gmra.mrb[106].mxu1 %v1473_v7 }
 0x104   : > { %2006 = vmatprep.mubr.msk.f32.mxu0 %vm2255_vm0, %v2256_v6  ;;  %2125 = vmatprep.mubr.msk.f32.mxu1 %vm2255_vm0, %v2256_v6 }
 0x106   : > { %v2761_v15 = vpop.f32.mrb[2].mxu0  ;;  %v2763_v16 = vpop.f32.mrb[2].mxu1 }
 0x107   : > { %v1698_v17 = vpop.f32.mrb[3].mxu0  ;;  %2007 = vmatmul.mubr.f32.gmra.mrb[108].mxu0 %v1445_v13  ;;  %v1817_v19 = vpop.f32.mrb[3].mxu1  ;;  %2126 = vmatmul.mubr.f32.gmra.mrb[108].mxu1 %v1474_v14 }
 0x108   : > { %2009 = vmatprep.mubr.msk.f32.mxu0 %vm2255_vm0, %v2256_v6  ;;  %2128 = vmatprep.mubr.msk.f32.mxu1 %vm2255_vm0, %v2256_v6 }
 0x10a   : > { %v2773_v22 = vpop.f32.mrb[4].mxu0  ;;  %v2775_v23 = vpop.f32.mrb[4].mxu1 }
 0x10b   : > { %v1701_v24 = vpop.f32.mrb[5].mxu0  ;;  %2010 = vmatmul.mubr.f32.gmra.mrb[110].mxu0 %v1446_v20  ;;  %v1820_v26 = vpop.f32.mrb[5].mxu1  ;;  %2129 = vmatmul.mubr.f32.gmra.mrb[110].mxu1 %v1475_v21 }
 0x10c   : > { %2012 = vmatprep.mubr.msk.f32.mxu0 %vm2255_vm0, %v2256_v6  ;;  %2131 = vmatprep.mubr.msk.f32.mxu1 %vm2255_vm0, %v2256_v6 }
 0x10e   : > { %v2785_v29 = vpop.f32.mrb[6].mxu0  ;;  %v2787_v30 = vpop.f32.mrb[6].mxu1 }
 0x10f   : > { %v1704_v31 = vpop.f32.mrb[7].mxu0  ;;  %2013 = vmatmul.mubr.f32.gmra.mrb[112].mxu0 %v1447_v27  ;;  %v1823_v33 = vpop.f32.mrb[7].mxu1  ;;  %2132 = vmatmul.mubr.f32.gmra.mrb[112].mxu1 %v1476_v28 }
 0x110   : > { %2015 = vmatprep.mubr.msk.f32.mxu0 %vm2255_vm0, %v2256_v6  ;;  %2134 = vmatprep.mubr.msk.f32.mxu1 %vm2255_vm0, %v2256_v6 }
 0x112   : > { %v2797_v36 = vpop.f32.mrb[8].mxu0  ;;  %v2799_v37 = vpop.f32.mrb[8].mxu1 }
 0x113   : > { %v1707_v38 = vpop.f32.mrb[9].mxu0  ;;  %2016 = vmatmul.mubr.f32.gmra.mrb[114].mxu0 %v1448_v34  ;;  %v1826_v40 = vpop.f32.mrb[9].mxu1  ;;  %2135 = vmatmul.mubr.f32.gmra.mrb[114].mxu1 %v1477_v35 }
 0x116   : > { %v2803_v41 = vpop.f32.mrb[10].mxu0  ;;  %v2805_v42 = vpop.f32.mrb[10].mxu1 }
 0x117   : > { %v1710_v43 = vpop.f32.mrb[11].mxu0  ;;  %v1829_v44 = vpop.f32.mrb[11].mxu1 }
 0x11a   : > { %v2809_v45 = vpop.f32.mrb[12].mxu0  ;;  %v2811_v46 = vpop.f32.mrb[12].mxu1 }
 0x11b   : > { %v1713_v47 = vpop.f32.mrb[13].mxu0  ;;  %v1832_v49 = vpop.f32.mrb[13].mxu1 }
 0x11e   : > { %v2815_v50 = vpop.f32.mrb[14].mxu0  ;;  %v2817_v51 = vpop.f32.mrb[14].mxu1 }
 0x11f   : > { %v1716_v52 = vpop.f32.mrb[15].mxu0  ;;  %v1835_v54 = vpop.f32.mrb[15].mxu1 }
 0x122   : > { %v2821_v55 = vpop.f32.mrb[16].mxu0  ;;  %v2823_v56 = vpop.f32.mrb[16].mxu1 }
 0x123   : > { %v1719_v57 = vpop.f32.mrb[17].mxu0  ;;  %v1838_v59 = vpop.f32.mrb[17].mxu1 }
 0x126   : > { %v2827_v60 = vpop.f32.mrb[18].mxu0  ;;  %v2829_v61 = vpop.f32.mrb[18].mxu1 }
 0x127   : > { %v1722_v62 = vpop.f32.mrb[19].mxu0  ;;  %v1841_v0 = vpop.f32.mrb[19].mxu1 }
 0x12a   : > { %v2833_v1 = vpop.f32.mrb[20].mxu0  ;;  %v2835_v2 = vpop.f32.mrb[20].mxu1 }
 0x12b   : > { %v1725_v3 = vpop.f32.mrb[21].mxu0  ;;  %v1844_v5 = vpop.f32.mrb[21].mxu1 }
 0x12e   : > { %v2839_v7 = vpop.f32.mrb[22].mxu0  ;;  %v2841_v10 = vpop.f32.mrb[22].mxu1 }
 0x12f   : > { %v1728_v12 = vpop.f32.mrb[23].mxu0  ;;  %v1847_v14 = vpop.f32.mrb[23].mxu1 }
 0x132   : > { %v2845_v17 = vpop.f32.mrb[24].mxu0  ;;  %v2847_v19 = vpop.f32.mrb[24].mxu1 }
 0x133   : > { %v1731_v20 = vpop.f32.mrb[25].mxu0  ;;  %v1850_v24 = vpop.f32.mrb[25].mxu1 }
 0x136   : > { %v2851_v26 = vpop.f32.mrb[26].mxu0  ;;  %v2853_v27 = vpop.f32.mrb[26].mxu1 }
 0x137   : > { %v1734_v28 = vpop.f32.mrb[27].mxu0  ;;  %v1853_v33 = vpop.f32.mrb[27].mxu1 }
 0x13a   : > { %v2857_v34 = vpop.f32.mrb[28].mxu0  ;;  %v2859_v35 = vpop.f32.mrb[28].mxu1 }
 0x13b   : > { %v1737_v38 = vpop.f32.mrb[29].mxu0  ;;  %v1856_v43 = vpop.f32.mrb[29].mxu1 }
 0x13e   : > { %v2863_v44 = vpop.f32.mrb[30].mxu0  ;;  %v2865_v47 = vpop.f32.mrb[30].mxu1 }
 0x13f   : > { %v1740_v49 = vpop.f32.mrb[31].mxu0  ;;  %v1859_v54 = vpop.f32.mrb[31].mxu1 }
 0x142   : > { %v2869_v57 = vpop.f32.mrb[32].mxu0  ;;  %v2871_v59 = vpop.f32.mrb[32].mxu1 }
 0x143   : > { %v1743_v62 = vpop.f32.mrb[33].mxu0  ;;  %v1862_v3 = vpop.f32.mrb[33].mxu1 }
 0x146   : > { %v2875_v5 = vpop.f32.mrb[34].mxu0  ;;  %v2877_v12 = vpop.f32.mrb[34].mxu1 }
 0x147   : > { %v1746_v14 = vpop.f32.mrb[35].mxu0  ;;  %v1865_v24 = vpop.f32.mrb[35].mxu1 }
 0x14a   : > { %v2881_v28 = vpop.f32.mrb[36].mxu0  ;;  %v2883_v33 = vpop.f32.mrb[36].mxu1 }
 0x14b   : > { %v1749_v38 = vpop.f32.mrb[37].mxu0  ;;  %v1868_v49 = vpop.f32.mrb[37].mxu1 }
 0x14e   : > { %v2887_v54 = vpop.f32.mrb[38].mxu0  ;;  %v2889_v62 = vpop.f32.mrb[38].mxu1 }
 0x14f   : > { %v1752_v3 = vpop.f32.mrb[39].mxu0  ;;  %v1871_v0 = vpop.f32.mrb[39].mxu1 }
 0x152   : > { %v2893_v20 = vpop.f32.mrb[40].mxu0  ;;  %v2895_v24 = vpop.f32.mrb[40].mxu1 }
 0x153   : > { %v1755_v52 = vpop.f32.mrb[41].mxu0  ;;  %v1874_v40 = vpop.f32.mrb[41].mxu1 }
 0x156   : > { %v2899_v43 = vpop.f32.mrb[42].mxu0  ;;  %v2901_v49 = vpop.f32.mrb[42].mxu1 }
 0x157   : > { %v1758_v31 = vpop.f32.mrb[43].mxu0  ;;  %v1877_v21 = vpop.f32.mrb[43].mxu1 }
 0x15a   : > { %v2905_v14 = vpop.f32.mrb[44].mxu0  ;;  %v2907_v0 = vpop.f32.mrb[44].mxu1 }
 0x15b   : > { %v1761_v13 = vpop.f32.mrb[45].mxu0  ;;  %v1880_v4 = vpop.f32.mrb[45].mxu1 }
 0x15e   : > { %v2911_v38 = vpop.f32.mrb[46].mxu0  ;;  %v2913_v40 = vpop.f32.mrb[46].mxu1 }
 0x15f   : > { %v1764_v63 = vpop.f32.mrb[47].mxu0  ;;  %v1883_v58 = vpop.f32.mrb[47].mxu1 }
 0x162   : > { %v2917_v3 = vpop.f32.mrb[48].mxu0  ;;  %v2919_v21 = vpop.f32.mrb[48].mxu1 }
 0x163   : > { %3146 = vst [vmem:[#allocation2_spill] sm:$0xff] %v2919_v21  ;;  %v1767_v53 = vpop.f32.mrb[49].mxu0  ;;  %v1886_v48 = vpop.f32.mrb[49].mxu1 }
 0x166   : > { %v2923_v52 = vpop.f32.mrb[50].mxu0  ;;  %v2925_v4 = vpop.f32.mrb[50].mxu1 }
 0x167   : > { %3147 = vst [vmem:[#allocation3_spill] sm:$0xff] %v2923_v52  ;;  %3148 = vst [vmem:[#allocation4_spill] sm:$0xff] %v2925_v4  ;;  %v1770_v6 = vpop.f32.mrb[51].mxu0  ;;  %v1889_v39 = vpop.f32.mrb[51].mxu1 }
 0x16a   : > { %v2929_v31 = vpop.f32.mrb[52].mxu0  ;;  %v2931_v58 = vpop.f32.mrb[52].mxu1 }
 0x16b   : > { %3149 = vst [vmem:[#allocation5_spill] sm:$0xff] %v2929_v31  ;;  %3150 = vst [vmem:[#allocation6_spill] sm:$0xff] %v2931_v58  ;;  %v1773_v32 = vpop.f32.mrb[53].mxu0  ;;  %v1892_v25 = vpop.f32.mrb[53].mxu1  ;;  %v3154_v31 = vmax.f32 %v2749_v8, %v2751_v9 }
 0x16e   : > { %v2935_v48 = vpop.f32.mrb[54].mxu0  ;;  %v2937_v13 = vpop.f32.mrb[54].mxu1 }
 0x16f   : > { %3151 = vst [vmem:[#allocation7_spill] sm:$0xff] %v2937_v13  ;;  %v1776_v18 = vpop.f32.mrb[55].mxu0  ;;  %v1895_v63 = vpop.f32.mrb[55].mxu1 }
 0x170   : > { %v2954_v63 = vld [vmem:[%s3136_s2] ss:$0 sm:$0xff] }
 0x172   : > { %v2941_v39 = vpop.f32.mrb[56].mxu0  ;;  %v2943_v11 = vpop.f32.mrb[56].mxu1 }
 0x173   : > { %3152 = vst [vmem:[#allocation8_spill] sm:$0xff] %v2941_v39  ;;  %3153 = vst [vmem:[#allocation9_spill] sm:$0xff] %v2943_v11  ;;  %v1779_v4 = vpop.f32.mrb[57].mxu0  ;;  %v1898_v53 = vpop.f32.mrb[57].mxu1 }
 0x174   : > { %v3155_v53 = vmax.f32 %v2761_v15, %v2763_v16  ;;  %v3156_v15 = vmax.f32 %v2773_v22, %v2775_v23 }
 0x176   : > { %v791_v25 = vpop.f32.mrb[58].mxu0  ;;  %v1060_v58 = vpop.f32.mrb[58].mxu1 }
 0x177   : > { %v935_v52 = vmax.f32 %v3154_v31, %v791_v25  ;;  %v1933_v18 = vpop.f32.mrb[59].mxu0  ;;  %v2052_v21 = vpop.f32.mrb[59].mxu1 }
 0x179   : > { %v1204_v6 = vmax.f32 %v935_v52, %v1060_v58 }
 0x17a   : > { %v796_v4 = vpop.f32.mrb[60].mxu0  ;;  %v1065_v13 = vpop.f32.mrb[60].mxu1 }
 0x17b   : > { %v1240_v32 = vadd.f32 %v2954_v63, %v1204_v6  ;;  %v936_v11 = vmax.f32 %v3155_v53, %v796_v4  ;;  %v1936_v39 = vpop.f32.mrb[61].mxu0  ;;  %v2055_v8 = vpop.f32.mrb[61].mxu1 }
 0x17d   : > { %v1269_v9 = vmax.f32 %v1240_v32, 0.0  ;;  %v1205_v52 = vmax.f32 %v936_v11, %v1065_v13  ;;  %v3157_v13 = vmax.f32 %v2785_v29, %v2787_v30 }
 0x17e   : > { %v801_v31 = vpop.f32.mrb[62].mxu0  ;;  %v1070_v21 = vpop.f32.mrb[62].mxu1 }
 0x17f   : > { %1299 = vst.msk [vmem:[%s2963_s13] sm:$0xff] %vm1298_vm1, %v1269_v9  ;;  %v1241_v58 = vadd.f32 %v2954_v63, %v1205_v52  ;;  %v937_v16 = vmax.f32 %v3156_v15, %v801_v31  ;;  %v1939_v6 = vpop.f32.mrb[63].mxu0  ;;  %v2058_v39 = vpop.f32.mrb[63].mxu1 }
 0x181   : > { %v1270_v25 = vmax.f32 %v1241_v58, 0.0  ;;  %v1206_v18 = vmax.f32 %v937_v16, %v1070_v21  ;;  %v3158_v58 = vmax.f32 %v2797_v36, %v2799_v37 }
 0x182   : > { %v806_v4 = vpop.f32.mrb[64].mxu0  ;;  %v1075_v53 = vpop.f32.mrb[64].mxu1 }
 0x183   : > { %1300 = vst.msk [vmem:[%s2963_s13 + $0x8] sm:$0xff] %vm1298_vm1, %v1270_v25  ;;  %v1242_v11 = vadd.f32 %v2954_v63, %v1206_v18  ;;  %v938_v32 = vmax.f32 %v3157_v13, %v806_v4  ;;  %v1942_v8 = vpop.f32.mrb[65].mxu0  ;;  %v2061_v9 = vpop.f32.mrb[65].mxu1  ;;  %v3159_v4 = vmax.f32 %v2803_v41, %v2805_v42 }
 0x185   : > { %v1271_v22 = vmax.f32 %v1242_v11, 0.0  ;;  %v1207_v23 = vmax.f32 %v938_v32, %v1075_v53 }
 0x186   : > { %v811_v52 = vpop.f32.mrb[66].mxu0  ;;  %v1080_v31 = vpop.f32.mrb[66].mxu1 }
 0x187   : > { %1301 = vst.msk [vmem:[%s2963_s13 + $0x10] sm:$0xff] %vm1298_vm1, %v1271_v22  ;;  %v1243_v21 = vadd.f32 %v2954_v63, %v1207_v23  ;;  %v939_v15 = vmax.f32 %v3158_v58, %v811_v52  ;;  %v1945_v16 = vpop.f32.mrb[67].mxu0  ;;  %v2064_v6 = vpop.f32.mrb[67].mxu1  ;;  %v3160_v22 = vmax.f32 %v2809_v45, %v2811_v46 }
 0x188   : > { %v3161_v16 = vmax.f32 %v2815_v50, %v2817_v51 }
 0x189   : > { %v1272_v29 = vmax.f32 %v1243_v21, 0.0  ;;  %v1208_v30 = vmax.f32 %v939_v15, %v1080_v31 }
 0x18a   : > { %v816_v39 = vpop.f32.mrb[68].mxu0  ;;  %v1085_v25 = vpop.f32.mrb[68].mxu1 }
 0x18b   : > { %1302 = vst.msk [vmem:[%s2963_s13 + $0x18] sm:$0xff] %vm1298_vm1, %v1272_v29  ;;  %v1244_v18 = vadd.f32 %v2954_v63, %v1208_v30  ;;  %v940_v53 = vmax.f32 %v3159_v4, %v816_v39  ;;  %v1948_v11 = vpop.f32.mrb[69].mxu0  ;;  %v2067_v13 = vpop.f32.mrb[69].mxu1  ;;  %v3162_v4 = vmax.f32 %v2821_v55, %v2823_v56 }
 0x18d   : > { %v1273_v36 = vmax.f32 %v1244_v18, 0.0  ;;  %v1209_v37 = vmax.f32 %v940_v53, %v1085_v25 }
 0x18e   : > { %v821_v32 = vpop.f32.mrb[70].mxu0  ;;  %v1090_v8 = vpop.f32.mrb[70].mxu1 }
 0x18f   : > { %1303 = vst.msk [vmem:[%s2963_s13 + $0x20] sm:$0xff] %vm1298_vm1, %v1273_v36  ;;  %v1245_v9 = vadd.f32 %v2954_v63, %v1209_v37  ;;  %v941_v23 = vmax.f32 %v3160_v22, %v821_v32  ;;  %v1951_v52 = vpop.f32.mrb[71].mxu0  ;;  %v2070_v31 = vpop.f32.mrb[71].mxu1 }
 0x191   : > { %v1274_v41 = vmax.f32 %v1245_v9, 0.0  ;;  %v1210_v42 = vmax.f32 %v941_v23, %v1090_v8  ;;  %v3163_v8 = vmax.f32 %v2827_v60, %v2829_v61 }
 0x192   : > { %v826_v21 = vpop.f32.mrb[72].mxu0  ;;  %v1095_v58 = vpop.f32.mrb[72].mxu1 }
 0x193   : > { %1304 = vst.msk [vmem:[%s2963_s13 + $0x28] sm:$0xff] %vm1298_vm1, %v1274_v41  ;;  %v1246_v15 = vadd.f32 %v2954_v63, %v1210_v42  ;;  %v942_v6 = vmax.f32 %v3161_v16, %v826_v21  ;;  %v1954_v29 = vpop.f32.mrb[73].mxu0  ;;  %v2073_v30 = vpop.f32.mrb[73].mxu1  ;;  %v3164_v42 = vmax.f32 %v2833_v1, %v2835_v2 }
 0x194   : > { %v3165_v30 = vmax.f32 %v2839_v7, %v2841_v10 }
 0x195   : > { %v1275_v45 = vmax.f32 %v1246_v15, 0.0  ;;  %v1211_v46 = vmax.f32 %v942_v6, %v1095_v58 }
 0x196   : > { %v831_v39 = vpop.f32.mrb[74].mxu0  ;;  %v1100_v25 = vpop.f32.mrb[74].mxu1 }
 0x197   : > { %1305 = vst.msk [vmem:[%s2963_s13 + $0x30] sm:$0xff] %vm1298_vm1, %v1275_v45  ;;  %v1247_v18 = vadd.f32 %v2954_v63, %v1211_v46  ;;  %v943_v53 = vmax.f32 %v3162_v4, %v831_v39  ;;  %v1957_v11 = vpop.f32.mrb[75].mxu0  ;;  %v2076_v13 = vpop.f32.mrb[75].mxu1 }
 0x199   : > { %v1276_v50 = vmax.f32 %v1247_v18, 0.0  ;;  %v1212_v51 = vmax.f32 %v943_v53, %v1100_v25  ;;  %v3166_v53 = vmax.f32 %v2845_v17, %v2847_v19 }
 0x19a   : > { %v836_v36 = vpop.f32.mrb[76].mxu0  ;;  %v1105_v37 = vpop.f32.mrb[76].mxu1 }
 0x19b   : > { %1306 = vst.msk [vmem:[%s2963_s13 + $0x38] sm:$0xff] %vm1298_vm1, %v1276_v50  ;;  %v1248_v32 = vadd.f32 %v2954_v63, %v1212_v51  ;;  %v944_v9 = vmax.f32 %v3163_v8, %v836_v36  ;;  %v1960_v22 = vpop.f32.mrb[77].mxu0  ;;  %v2079_v23 = vpop.f32.mrb[77].mxu1 }
 0x19d   : > { %v1277_v55 = vmax.f32 %v1248_v32, 0.0  ;;  %v1213_v56 = vmax.f32 %v944_v9, %v1105_v37  ;;  %v3167_v32 = vmax.f32 %v2851_v26, %v2853_v27 }
 0x19e   : > { %v841_v52 = vpop.f32.mrb[78].mxu0  ;;  %v1110_v31 = vpop.f32.mrb[78].mxu1 }
 0x19f   : > { %1307 = vst.msk [vmem:[%s2963_s13 + $0x40] sm:$0xff] %vm1298_vm1, %v1277_v55  ;;  %v1249_v41 = vadd.f32 %v2954_v63, %v1213_v56  ;;  %v945_v21 = vmax.f32 %v3164_v42, %v841_v52  ;;  %v1963_v58 = vpop.f32.mrb[79].mxu0  ;;  %v2082_v15 = vpop.f32.mrb[79].mxu1  ;;  %v3168_v52 = vmax.f32 %v2857_v34, %v2859_v35 }
 0x1a1   : > { %v1278_v60 = vmax.f32 %v1249_v41, 0.0  ;;  %v1214_v61 = vmax.f32 %v945_v21, %v1110_v31 }
 0x1a2   : > { %v846_v16 = vpop.f32.mrb[80].mxu0  ;;  %v1115_v6 = vpop.f32.mrb[80].mxu1 }
 0x1a3   : > { %1308 = vst.msk [vmem:[%s2963_s13 + $0x48] sm:$0xff] %vm1298_vm1, %v1278_v60  ;;  %v1250_v29 = vadd.f32 %v2954_v63, %v1214_v61  ;;  %v946_v45 = vmax.f32 %v3165_v30, %v846_v16  ;;  %v1966_v46 = vpop.f32.mrb[81].mxu0  ;;  %v2085_v39 = vpop.f32.mrb[81].mxu1  ;;  %v3169_v60 = vmax.f32 %v2863_v44, %v2865_v47 }
 0x1a4   : > { %v3170_v46 = vmax.f32 %v2869_v57, %v2871_v59 }
 0x1a5   : > { %v1279_v1 = vmax.f32 %v1250_v29, 0.0  ;;  %v1215_v2 = vmax.f32 %v946_v45, %v1115_v6 }
 0x1a6   : > { %v851_v25 = vpop.f32.mrb[82].mxu0  ;;  %v1120_v18 = vpop.f32.mrb[82].mxu1 }
 0x1a7   : > { %1309 = vst.msk [vmem:[%s2963_s13 + $0x50] sm:$0xff] %vm1298_vm1, %v1279_v1  ;;  %v1251_v4 = vadd.f32 %v2954_v63, %v1215_v2  ;;  %v947_v11 = vmax.f32 %v3166_v53, %v851_v25  ;;  %v1969_v13 = vpop.f32.mrb[83].mxu0  ;;  %v2088_v50 = vpop.f32.mrb[83].mxu1  ;;  %v3171_v53 = vmax.f32 %v2875_v5, %v2877_v12 }
 0x1a9   : > { %v1280_v7 = vmax.f32 %v1251_v4, 0.0  ;;  %v1216_v10 = vmax.f32 %v947_v11, %v1120_v18 }
 0x1aa   : > { %v856_v51 = vpop.f32.mrb[84].mxu0  ;;  %v1125_v36 = vpop.f32.mrb[84].mxu1 }
 0x1ab   : > { %1310 = vst.msk [vmem:[%s2963_s13 + $0x58] sm:$0xff] %vm1298_vm1, %v1280_v7  ;;  %v1252_v37 = vadd.f32 %v2954_v63, %v1216_v10  ;;  %v948_v8 = vmax.f32 %v3167_v32, %v856_v51  ;;  %v1972_v9 = vpop.f32.mrb[85].mxu0  ;;  %v2091_v22 = vpop.f32.mrb[85].mxu1 }
 0x1ad   : > { %v1281_v17 = vmax.f32 %v1252_v37, 0.0  ;;  %v1217_v19 = vmax.f32 %v948_v8, %v1125_v36  ;;  %v3172_v36 = vmax.f32 %v2881_v28, %v2883_v33 }
 0x1ae   : > { %v861_v23 = vpop.f32.mrb[86].mxu0  ;;  %v1130_v55 = vpop.f32.mrb[86].mxu1 }
 0x1af   : > { %1311 = vst.msk [vmem:[%s2963_s13 + $0x60] sm:$0xff] %vm1298_vm1, %v1281_v17  ;;  %v1253_v56 = vadd.f32 %v2954_v63, %v1217_v19  ;;  %v949_v31 = vmax.f32 %v3168_v52, %v861_v23  ;;  %v1975_v41 = vpop.f32.mrb[87].mxu0  ;;  %v2094_v42 = vpop.f32.mrb[87].mxu1  ;;  %v3173_v19 = vmax.f32 %v2887_v54, %v2889_v62 }
 0x1b0   : > { %v3174_v42 = vmax.f32 %v2893_v20, %v2895_v24 }
 0x1b1   : > { %v1282_v26 = vmax.f32 %v1253_v56, 0.0  ;;  %v1218_v27 = vmax.f32 %v949_v31, %v1130_v55 }
 0x1b2   : > { %v866_v21 = vpop.f32.mrb[88].mxu0  ;;  %v1135_v58 = vpop.f32.mrb[88].mxu1 }
 0x1b3   : > { %1312 = vst.msk [vmem:[%s2963_s13 + $0x68] sm:$0xff] %vm1298_vm1, %v1282_v26  ;;  %v1254_v15 = vadd.f32 %v2954_v63, %v1218_v27  ;;  %v950_v61 = vmax.f32 %v3169_v60, %v866_v21  ;;  %v1978_v16 = vpop.f32.mrb[89].mxu0  ;;  %v2097_v6 = vpop.f32.mrb[89].mxu1 }
 0x1b5   : > { %v1283_v34 = vmax.f32 %v1254_v15, 0.0  ;;  %v1219_v35 = vmax.f32 %v950_v61, %v1135_v58  ;;  %v3175_v61 = vmax.f32 %v2899_v43, %v2901_v49 }
 0x1b6   : > { %v871_v29 = vpop.f32.mrb[90].mxu0  ;;  %v1140_v30 = vpop.f32.mrb[90].mxu1 }
 0x1b7   : > { %1313 = vst.msk [vmem:[%s2963_s13 + $0x70] sm:$0xff] %vm1298_vm1, %v1283_v34  ;;  %v1255_v45 = vadd.f32 %v2954_v63, %v1219_v35  ;;  %v951_v39 = vmax.f32 %v3170_v46, %v871_v29  ;;  %v1981_v1 = vpop.f32.mrb[91].mxu0  ;;  %v2100_v2 = vpop.f32.mrb[91].mxu1 }
 0x1b9   : > { %v1284_v44 = vmax.f32 %v1255_v45, 0.0  ;;  %v1220_v47 = vmax.f32 %v951_v39, %v1140_v30  ;;  %v3176_v45 = vmax.f32 %v2905_v14, %v2907_v0 }
 0x1ba   : > { %v876_v25 = vpop.f32.mrb[92].mxu0  ;;  %v1145_v18 = vpop.f32.mrb[92].mxu1 }
 0x1bb   : > { %1314 = vst.msk [vmem:[%s2963_s13 + $0x78] sm:$0xff] %vm1298_vm1, %v1284_v44  ;;  %v1256_v4 = vadd.f32 %v2954_v63, %v1220_v47  ;;  %v952_v11 = vmax.f32 %v3171_v53, %v876_v25  ;;  %v1984_v13 = vpop.f32.mrb[93].mxu0  ;;  %v2103_v50 = vpop.f32.mrb[93].mxu1  ;;  %v3177_v25 = vmax.f32 %v2911_v38, %v2913_v40 }
 0x1bd   : > { %v1285_v57 = vmax.f32 %v1256_v4, 0.0  ;;  %v1221_v59 = vmax.f32 %v952_v11, %v1145_v18 }
 0x1be   : > { %v881_v7 = vpop.f32.mrb[94].mxu0  ;;  %v1150_v10 = vpop.f32.mrb[94].mxu1 }
 0x1bf   : > { %1315 = vst.msk [vmem:[%s2963_s13 + $0x80] sm:$0xff] %vm1298_vm1, %v1285_v57  ;;  %v1257_v51 = vadd.f32 %v2954_v63, %v1221_v59  ;;  %v953_v37 = vmax.f32 %v3172_v36, %v881_v7  ;;  %v1987_v32 = vpop.f32.mrb[95].mxu0  ;;  %v2106_v8 = vpop.f32.mrb[95].mxu1  ;;  %v3178_v57 = vld [vmem:[#allocation2_spill] sm:$0xff] }
 0x1c0   : > { %v3179_v59 = vmax.f32 %v2917_v3, %v3178_v57  ;;  %v3180_v8 = vld [vmem:[#allocation3_spill] sm:$0xff] }
 0x1c1   : > { %v1286_v5 = vmax.f32 %v1257_v51, 0.0  ;;  %v1222_v12 = vmax.f32 %v953_v37, %v1150_v10 }
 0x1c2   : > { %v886_v9 = vpop.f32.mrb[96].mxu0  ;;  %v1155_v22 = vpop.f32.mrb[96].mxu1 }
 0x1c3   : > { %1316 = vst.msk [vmem:[%s2963_s13 + $0x88] sm:$0xff] %vm1298_vm1, %v1286_v5  ;;  %v1258_v17 = vadd.f32 %v2954_v63, %v1222_v12  ;;  %v954_v23 = vmax.f32 %v3173_v19, %v886_v9  ;;  %v1990_v55 = vpop.f32.mrb[97].mxu0  ;;  %v2109_v56 = vpop.f32.mrb[97].mxu1  ;;  %v3181_v5 = vld [vmem:[#allocation4_spill] sm:$0xff] }
 0x1c4   : > { %v3182_v12 = vmax.f32 %v3180_v8, %v3181_v5 }
 0x1c5   : > { %v1287_v28 = vmax.f32 %v1258_v17, 0.0  ;;  %v1223_v33 = vmax.f32 %v954_v23, %v1155_v22 }
 0x1c6   : > { %v891_v52 = vpop.f32.mrb[98].mxu0  ;;  %v1160_v31 = vpop.f32.mrb[98].mxu1 }
 0x1c7   : > { %1317 = vst.msk [vmem:[%s2963_s13 + $0x90] sm:$0xff] %vm1298_vm1, %v1287_v28  ;;  %v1259_v41 = vadd.f32 %v2954_v63, %v1223_v33  ;;  %v955_v26 = vmax.f32 %v3174_v42, %v891_v52  ;;  %v1993_v27 = vpop.f32.mrb[99].mxu0  ;;  %v2112_v21 = vpop.f32.mrb[99].mxu1  ;;  %v3183_v28 = vld [vmem:[#allocation5_spill] sm:$0xff]  ;;  %v3184_v33 = vld [vmem:[#allocation6_spill] sm:$0xff] }
 0x1c8   : > { %v3185_v52 = vmax.f32 %v3183_v28, %v3184_v33 }
 0x1c9   : > { %v1288_v54 = vmax.f32 %v1259_v41, 0.0  ;;  %v1224_v62 = vmax.f32 %v955_v26, %v1160_v31 }
 0x1ca   : > { %v896_v58 = vpop.f32.mrb[100].mxu0  ;;  %v1165_v15 = vpop.f32.mrb[100].mxu1 }
 0x1cb   : > { %1318 = vst.msk [vmem:[%s2963_s13 + $0x98] sm:$0xff] %vm1298_vm1, %v1288_v54  ;;  %v1260_v60 = vadd.f32 %v2954_v63, %v1224_v62  ;;  %v956_v16 = vmax.f32 %v3175_v61, %v896_v58  ;;  %v1996_v6 = vpop.f32.mrb[101].mxu0  ;;  %v2115_v34 = vpop.f32.mrb[101].mxu1  ;;  %v3186_v58 = vld [vmem:[#allocation7_spill] sm:$0xff] }
 0x1cd   : > { %v1289_v20 = vmax.f32 %v1260_v60, 0.0  ;;  %v1225_v24 = vmax.f32 %v956_v16, %v1165_v15  ;;  %v3187_v15 = vmax.f32 %v2935_v48, %v3186_v58 }
 0x1ce   : > { %v901_v35 = vpop.f32.mrb[102].mxu0  ;;  %v1170_v29 = vpop.f32.mrb[102].mxu1 }
 0x1cf   : > { %1319 = vst.msk [vmem:[%s2963_s13 + $0xa0] sm:$0xff] %vm1298_vm1, %v1289_v20  ;;  %v1261_v30 = vadd.f32 %v2954_v63, %v1225_v24  ;;  %v957_v46 = vmax.f32 %v3176_v45, %v901_v35  ;;  %v1999_v39 = vpop.f32.mrb[103].mxu0  ;;  %v2118_v1 = vpop.f32.mrb[103].mxu1 }
 0x1d1   : > { %v1290_v43 = vmax.f32 %v1261_v30, 0.0  ;;  %v1226_v49 = vmax.f32 %v957_v46, %v1170_v29  ;;  %v3188_v29 = vld [vmem:[#allocation8_spill] sm:$0xff]  ;;  %v3189_v30 = vld [vmem:[#allocation9_spill] sm:$0xff] }
 0x1d2   : > { %v906_v2 = vpop.f32.mrb[104].mxu0  ;;  %v1175_v44 = vpop.f32.mrb[104].mxu1  ;;  %v3190_v45 = vmax.f32 %v3188_v29, %v3189_v30 }
 0x1d3   : > { %1320 = vst.msk [vmem:[%s2963_s13 + $0xa8] sm:$0xff] %vm1298_vm1, %v1290_v43  ;;  %v1262_v47 = vadd.f32 %v2954_v63, %v1226_v49  ;;  %v958_v18 = vmax.f32 %v3177_v25, %v906_v2  ;;  %v2002_v4 = vpop.f32.mrb[105].mxu0  ;;  %v2121_v53 = vpop.f32.mrb[105].mxu1 }
 0x1d5   : > { %v1291_v14 = vmax.f32 %v1262_v47, 0.0  ;;  %v1227_v0 = vmax.f32 %v958_v18, %v1175_v44 }
 0x1d6   : > { %v911_v11 = vpop.f32.mrb[106].mxu0  ;;  %v1180_v13 = vpop.f32.mrb[106].mxu1 }
 0x1d7   : > { %1321 = vst.msk [vmem:[%s2963_s13 + $0xb0] sm:$0xff] %vm1298_vm1, %v1291_v14  ;;  %v1263_v50 = vadd.f32 %v2954_v63, %v1227_v0  ;;  %v959_v7 = vmax.f32 %v3179_v59, %v911_v11  ;;  %v2005_v10 = vpop.f32.mrb[107].mxu0  ;;  %v2124_v51 = vpop.f32.mrb[107].mxu1 }
 0x1d9   : > { %v1292_v38 = vmax.f32 %v1263_v50, 0.0  ;;  %v1228_v40 = vmax.f32 %v959_v7, %v1180_v13 }
 0x1da   : > { %v916_v36 = vpop.f32.mrb[108].mxu0  ;;  %v1185_v37 = vpop.f32.mrb[108].mxu1 }
 0x1db   : > { %1322 = vst.msk [vmem:[%s2963_s13 + $0xb8] sm:$0xff] %vm1298_vm1, %v1292_v38  ;;  %v1264_v32 = vadd.f32 %v2954_v63, %v1228_v40  ;;  %v960_v9 = vmax.f32 %v3182_v12, %v916_v36  ;;  %v2008_v22 = vpop.f32.mrb[109].mxu0  ;;  %v2127_v17 = vpop.f32.mrb[109].mxu1 }
 0x1dd   : > { %v1293_v3 = vmax.f32 %v1264_v32, 0.0  ;;  %v1229_v19 = vmax.f32 %v960_v9, %v1185_v37 }
 0x1de   : > { %v921_v23 = vpop.f32.mrb[110].mxu0  ;;  %v1190_v55 = vpop.f32.mrb[110].mxu1 }
 0x1df   : > { %1323 = vst.msk [vmem:[%s2963_s13 + $0xc0] sm:$0xff] %vm1298_vm1, %v1293_v3  ;;  %v1265_v56 = vadd.f32 %v2954_v63, %v1229_v19  ;;  %v961_v31 = vmax.f32 %v3185_v52, %v921_v23  ;;  %v2011_v41 = vpop.f32.mrb[111].mxu0  ;;  %v2130_v42 = vpop.f32.mrb[111].mxu1 }
 0x1e1   : > { %v1294_v26 = vmax.f32 %v1265_v56, 0.0  ;;  %v1230_v27 = vmax.f32 %v961_v31, %v1190_v55 }
 0x1e2   : > { %v926_v21 = vpop.f32.mrb[112].mxu0  ;;  %v1195_v54 = vpop.f32.mrb[112].mxu1 }
 0x1e3   : > { %1324 = vst.msk [vmem:[%s2963_s13 + $0xc8] sm:$0xff] %vm1298_vm1, %v1294_v26  ;;  %v1266_v62 = vadd.f32 %v2954_v63, %v1230_v27  ;;  %v962_v60 = vmax.f32 %v3187_v15, %v926_v21  ;;  %v2014_v61 = vpop.f32.mrb[113].mxu0  ;;  %v2133_v16 = vpop.f32.mrb[113].mxu1 }
 0x1e5   : > { %v1295_v6 = vmax.f32 %v1266_v62, 0.0  ;;  %v1231_v34 = vmax.f32 %v962_v60, %v1195_v54 }
 0x1e6   : > { %v931_v20 = vpop.f32.mrb[114].mxu0  ;;  %v1200_v24 = vpop.f32.mrb[114].mxu1 }
 0x1e7   : > { %1325 = vst.msk [vmem:[%s2963_s13 + $0xd0] sm:$0xff] %vm1298_vm1, %v1295_v6  ;;  %v1267_v35 = vadd.f32 %v2954_v63, %v1231_v34  ;;  %v963_v46 = vmax.f32 %v3190_v45, %v931_v20  ;;  %v2017_v39 = vpop.f32.mrb[115].mxu0  ;;  %v2136_v1 = vpop.f32.mrb[115].mxu1 }
 0x1e9   : > { %v1296_v43 = vmax.f32 %v1267_v35, 0.0  ;;  %v1232_v48 = vmax.f32 %v963_v46, %v1200_v24 }
 0x1eb   : > { %1326 = vst.msk [vmem:[%s2963_s13 + $0xd8] sm:$0xff] %vm1298_vm1, %v1296_v43  ;;  %v1268_v49 = vadd.f32 %v2954_v63, %v1232_v48 }
 0x1ed   : > { %v1297_v2 = vmax.f32 %v1268_v49, 0.0 }
 0x1ef   : > { %1328 = vst.msk [vmem:[%s2963_s13 + $0xe0] sm:$0x1] %vm1327_vm2, %v1297_v2 }
 0x1f0 PF: > { %s13_s12 = sadd.s32 1, %s2252_s12  }
 0x1f1   : > { %p10_p4 = scmp.ge.s32.totalorder %s13_s12, 4  }
 0x1f3   :  { %12 = sbr.rel (!%p10_p4) target bundleno = 1 (0x1), region = 65 }

// kernel: cnn_forward.4
= control target key start
LH: loop header
LB: loop body
LE: loop exit
PB: predicated region body
PF: predicated region fallthrough
CT: control target
= control target key end

     0   :  { %s1198_s12 = smov 0   ;;  %s1532_s0 = inlined_call_operand.vmem [shape: f32[2,4,49,256], index: 0, kind: input, shape index: {}]   ;;  %s1533_s1 = inlined_call_operand.vmem [shape: f32[256,32], index: 1, kind: input, shape index: {}]   ;;  %s1534_s2 = inlined_call_operand.vmem [shape: f32[1,32], index: 2, kind: input, shape index: {}]   ;;  %s1535_s3 = inlined_call_operand.vmem [shape: f32[2,49,32], index: 3, kind: output, shape index: {}]  }
   0x1 LB: > { %s768_s13 = sadd.s32 4294967295, %s1176_s12   ;;  %p772_p0 = scmp.ge.s32.totalorder %s1176_s12, 1  ;;  %s1176_s12 = sphi %s1198_s12, %s13_s12  }
   0x2   : > { %p137_p1 = scmp.lt.s32.totalorder %s1176_s12, 3 }
   0x4   : > { %p138_p2 = pnand %p772_p0, %p137_p1 }
   0x5   : > { %v187_v0 = vld [vmem:[%s1533_s1 + $0x80] sm:$0xff] (!%p138_p2)  ;;  %v188_v1 = vld [vmem:[%s1533_s1 + $0x88] sm:$0xff] (!%p138_p2)  ;;  %p161_p3 = scmp.lt.s32.totalorder (!%p138_p2), %s768_s13, 1  ;;  %v189_v5 = vld [vmem:[%s1533_s1 + $0x90] sm:$0xff] (!%p138_p2)  ;;  %vm704_vm0 = vcmask (!%p138_p2), 261120   ;;  %vm711_vm1 = vcmask (!%p138_p2), 253952  }
   0x6   : > { %141 = sbr.rel (%p138_p2) target bundleno = 320 (0x140), region = 32  ;;  %v171_v2 = vld [vmem:[%s1533_s1] sm:$0xff] (!%p138_p2)  ;;  %v1215_v3 = vpack.c.bf16 (!%p138_p2), %v188_v1, %v187_v0  ;;  %v172_v4 = vld [vmem:[%s1533_s1 + $0x8] sm:$0xff] (!%p138_p2)  ;;  %v190_v6 = vld [vmem:[%s1533_s1 + $0x98] sm:$0xff] (!%p138_p2) }
   0x7   : > { %v1226_v7 = vpack.c.bf16 (!%p138_p2), %v172_v4, %v171_v2  ;;  %v1228_v8 = vpack.c.bf16 (!%p138_p2), %v190_v6, %v189_v5  ;;  %v173_v9 = vld [vmem:[%s1533_s1 + $0x10] sm:$0xff] (!%p138_p2)  ;;  %v174_v10 = vld [vmem:[%s1533_s1 + $0x18] sm:$0xff] (!%p138_p2)  ;;  %v191_v11 = vld [vmem:[%s1533_s1 + $0xa0] sm:$0xff] (!%p138_p2) }
   0x8   : > { %1033 = vmatprep.subr.bf16.mxu0 (!%p138_p2), %v1215_v3  ;;  %1065 = vmatprep.subr.bf16.mxu1 (!%p138_p2), %v1215_v3  ;;  %v192_v12 = vld [vmem:[%s1533_s1 + $0xa8] sm:$0xff] (!%p138_p2)  ;;  %v1248_v13 = vpack.c.bf16 (!%p138_p2), %v174_v10, %v173_v9  ;;  %v175_v15 = vld [vmem:[%s1533_s1 + $0x20] sm:$0xff] (!%p138_p2)  ;;  %v193_v17 = vld [vmem:[%s1533_s1 + $0xb0] sm:$0xff] (!%p138_p2) }
   0x9   : > { %1035 = vmatpush3.bf16.msra.mxu0 (!%p138_p2), %v1226_v7  ;;  %1067 = vmatpush3.bf16.msra.mxu1 (!%p138_p2), %v1226_v7  ;;  %v1253_v14 = vpack.c.bf16 (!%p138_p2), %v192_v12, %v191_v11  ;;  %v176_v16 = vld [vmem:[%s1533_s1 + $0x28] sm:$0xff] (!%p138_p2)  ;;  %v194_v18 = vld [vmem:[%s1533_s1 + $0xb8] sm:$0xff] (!%p138_p2)  ;;  %v177_v21 = vld [vmem:[%s1533_s1 + $0x30] sm:$0xff] (!%p138_p2) }
   0xa   : > { %1037 = vmatprep.subr.bf16.mxu0 (!%p138_p2), %v1228_v8  ;;  %1069 = vmatprep.subr.bf16.mxu1 (!%p138_p2), %v1228_v8  ;;  %v1274_v19 = vpack.c.bf16 (!%p138_p2), %v176_v16, %v175_v15  ;;  %v1278_v20 = vpack.c.bf16 (!%p138_p2), %v194_v18, %v193_v17  ;;  %v178_v22 = vld [vmem:[%s1533_s1 + $0x38] sm:$0xff] (!%p138_p2)  ;;  %v195_v23 = vld [vmem:[%s1533_s1 + $0xc0] sm:$0xff] (!%p138_p2)  ;;  %v196_v24 = vld [vmem:[%s1533_s1 + $0xc8] sm:$0xff] (!%p138_p2) }
   0xb   : > { %v1296_v27 = vpack.c.bf16 (!%p138_p2), %v178_v22, %v177_v21  ;;  %v1300_v28 = vpack.c.bf16 (!%p138_p2), %v196_v24, %v195_v23  ;;  %v179_v29 = vld [vmem:[%s1533_s1 + $0x40] sm:$0xff] (!%p138_p2)  ;;  %v180_v30 = vld [vmem:[%s1533_s1 + $0x48] sm:$0xff] (!%p138_p2)  ;;  %v197_v31 = vld [vmem:[%s1533_s1 + $0xd0] sm:$0xff] (!%p138_p2) }
   0xc   : > { %v198_v32 = vld [vmem:[%s1533_s1 + $0xd8] sm:$0xff] (!%p138_p2)  ;;  %v1316_v33 = vpack.c.bf16 (!%p138_p2), %v180_v30, %v179_v29  ;;  %v181_v35 = vld [vmem:[%s1533_s1 + $0x50] sm:$0xff] (!%p138_p2)  ;;  %v199_v37 = vld [vmem:[%s1533_s1 + $0xe0] sm:$0xff] (!%p138_p2) }
   0xd   : > { %s1537_s13 = smov (!%p161_p3, %s768_s13), 1  ;;  %1039 = vmatpush3.bf16.msra.mxu0 %v1248_v13  ;;  %1071 = vmatpush3.bf16.msra.mxu1 %v1248_v13  ;;  %v1320_v34 = vpack.c.bf16 %v198_v32, %v197_v31  ;;  %v182_v36 = vld [vmem:[%s1533_s1 + $0x58] sm:$0xff]  ;;  %v200_v38 = vld [vmem:[%s1533_s1 + $0xe8] sm:$0xff]  ;;  %v183_v41 = vld [vmem:[%s1533_s1 + $0x60] sm:$0xff] }
   0xe   : > { %s1160_s7 = smul.u32 448, %s1537_s13  ;;  %1041 = vmatprep.subr.bf16.mxu0 %v1253_v14  ;;  %1073 = vmatprep.subr.bf16.mxu1 %v1253_v14  ;;  %v1336_v39 = vpack.c.bf16 %v182_v36, %v181_v35  ;;  %v1340_v40 = vpack.c.bf16 %v200_v38, %v199_v37  ;;  %v184_v42 = vld [vmem:[%s1533_s1 + $0x68] sm:$0xff]  ;;  %v201_v43 = vld [vmem:[%s1533_s1 + $0xf0] sm:$0xff]  ;;  %v202_v44 = vld [vmem:[%s1533_s1 + $0xf8] sm:$0xff] }
   0xf   : > { %v1356_v45 = vpack.c.bf16 %v184_v42, %v183_v41  ;;  %v1360_v46 = vpack.c.bf16 %v202_v44, %v201_v43  ;;  %v185_v47 = vld [vmem:[%s1533_s1 + $0x70] sm:$0xff]  ;;  %v186_v48 = vld [vmem:[%s1533_s1 + $0x78] sm:$0xff] }
  0x10   : > { %s1270_s20 = scalar_lea.vmem %s1532_s0, %s1160_s7  ;;  %v1370_v49 = vpack.c.bf16 %v186_v48, %v185_v47 }
  0x11   : > { %v204_v25 = vld [vmem:[%s1270_s20 + $0x8] sm:$0xff]  ;;  %v776_v26 = vld [vmem:[%s1270_s20 + $0x78] sm:$0xff]  ;;  %1043 = vmatpush3.bf16.msra.mxu0 %v1274_v19  ;;  %1075 = vmatpush3.bf16.msra.mxu1 %v1274_v19  ;;  %v203_v50 = vld [vmem:[%s1270_s20] sm:$0xff] }
  0x12   : > { %281 = vmatprep.mubr.f32.mxu0 %v204_v25  ;;  %1045 = vmatprep.subr.bf16.mxu0 %v1278_v20  ;;  %v775_v51 = vld [vmem:[%s1270_s20 + $0x70] sm:$0xff]  ;;  %v206_v52 = vld [vmem:[%s1270_s20 + $0x18] sm:$0xff]  ;;  %v778_v53 = vld [vmem:[%s1270_s20 + $0x88] sm:$0xff] }
  0x13   : > { %1077 = vmatprep.subr.bf16.mxu1 %v1278_v20  ;;  %396 = vmatprep.mubr.f32.mxu1 %v776_v26  ;;  %v205_v54 = vld [vmem:[%s1270_s20 + $0x10] sm:$0xff]  ;;  %v777_v55 = vld [vmem:[%s1270_s20 + $0x80] sm:$0xff]  ;;  %v208_v56 = vld [vmem:[%s1270_s20 + $0x28] sm:$0xff] }
  0x14   : > { %v780_v57 = vld [vmem:[%s1270_s20 + $0x98] sm:$0xff]  ;;  %v207_v58 = vld [vmem:[%s1270_s20 + $0x20] sm:$0xff]  ;;  %v779_v59 = vld [vmem:[%s1270_s20 + $0x90] sm:$0xff] }
  0x15   : > { %1047 = vmatpush3.bf16.msra.mxu0 %v1296_v27  ;;  %1079 = vmatpush3.bf16.msra.mxu1 %v1296_v27  ;;  %v210_v60 = vld [vmem:[%s1270_s20 + $0x38] sm:$0xff]  ;;  %v782_v61 = vld [vmem:[%s1270_s20 + $0xa8] sm:$0xff]  ;;  %v209_v62 = vld [vmem:[%s1270_s20 + $0x30] sm:$0xff] }
  0x16   : > { %1049 = vmatprep.subr.bf16.mxu0 %v1300_v28  ;;  %1081 = vmatprep.subr.bf16.mxu1 %v1300_v28  ;;  %v781_v63 = vld [vmem:[%s1270_s20 + $0xa0] sm:$0xff]  ;;  %v212_v0 = vld [vmem:[%s1270_s20 + $0x48] sm:$0xff]  ;;  %v784_v1 = vld [vmem:[%s1270_s20 + $0xb8] sm:$0xff] }
  0x17   : > { %v211_v2 = vld [vmem:[%s1270_s20 + $0x40] sm:$0xff]  ;;  %v214_v4 = vld [vmem:[%s1270_s20 + $0x58] sm:$0xff]  ;;  %v786_v5 = vld [vmem:[%s1270_s20 + $0xc8] sm:$0xff] }
  0x18   : > { %v213_v6 = vld [vmem:[%s1270_s20 + $0x50] sm:$0xff]  ;;  %v788_v9 = vld [vmem:[%s1270_s20 + $0xd8] sm:$0x1]  ;;  %v215_v10 = vld [vmem:[%s1270_s20 + $0x60] sm:$0x1] }
  0x19   : > { %1051 = vmatpush3.bf16.msra.mxu0 %v1316_v33  ;;  %1083 = vmatpush3.bf16.msra.mxu1 %v1316_v33  ;;  %v787_v11 = vld [vmem:[%s1270_s20 + $0xd0] sm:$0x1]  ;;  %v790_v12 = vld [vmem:[%s1270_s20 + $0xe8] sm:$0xff]  ;;  %v792_v16 = vld [vmem:[%s1270_s20 + $0xf8] sm:$0xff] }
  0x1a   : > { %1053 = vmatprep.subr.bf16.mxu0 %v1320_v34  ;;  %1085 = vmatprep.subr.bf16.mxu1 %v1320_v34  ;;  %v803_v15 = vld [vmem:[%s1270_s20 + $0x150] sm:$0xff]  ;;  %v806_v17 = vld [vmem:[%s1270_s20 + $0x168] sm:$0xff]  ;;  %v808_v21 = vld [vmem:[%s1270_s20 + $0x178] sm:$0xff] }
  0x1b   : > { %v791_v18 = vld [vmem:[%s1270_s20 + $0xf0] sm:$0xff]  ;;  %v793_v22 = vld [vmem:[%s1270_s20 + $0x100] sm:$0xff]  ;;  %v796_v24 = vld [vmem:[%s1270_s20 + $0x118] sm:$0xff] }
  0x1c   : > { %v807_v23 = vld [vmem:[%s1270_s20 + $0x170] sm:$0xff]  ;;  %v810_v25 = vld [vmem:[%s1270_s20 + $0x188] sm:$0xff]  ;;  %v812_v29 = vld [vmem:[%s1270_s20 + $0x198] sm:$0xff] }
  0x1d   : > { %1055 = vmatpush3.bf16.msra.mxu0 %v1336_v39  ;;  %1087 = vmatpush3.bf16.msra.mxu1 %v1336_v39  ;;  %v795_v26 = vld [vmem:[%s1270_s20 + $0x110] sm:$0xff]  ;;  %v797_v30 = vld [vmem:[%s1270_s20 + $0x120] sm:$0xff]  ;;  %v800_v32 = vld [vmem:[%s1270_s20 + $0x138] sm:$0xff] }
  0x1e   : > { %1057 = vmatprep.subr.bf16.mxu0 %v1340_v40  ;;  %1089 = vmatprep.subr.bf16.mxu1 %v1340_v40  ;;  %v811_v31 = vld [vmem:[%s1270_s20 + $0x190] sm:$0xff]  ;;  %v813_v35 = vld [vmem:[%s1270_s20 + $0x1a0] sm:$0xff]  ;;  %v802_v36 = vld [vmem:[%s1270_s20 + $0x148] sm:$0x1] }
  0x1f   : > { %v816_v37 = vld [vmem:[%s1270_s20 + $0x1b8] sm:$0x1]  ;;  %v801_v38 = vld [vmem:[%s1270_s20 + $0x140] sm:$0x1] }
  0x21   : > { %1059 = vmatpush3.bf16.msra.mxu0 %v1356_v45  ;;  %1091 = vmatpush3.bf16.msra.mxu1 %v1356_v45 }
  0x22   : > { %1061 = vmatprep.subr.bf16.mxu0 %v1360_v46  ;;  %1093 = vmatprep.subr.bf16.mxu1 %v1360_v46 }
  0x25   : > { %1063 = vmatpush3.bf16.msra.mxu0 %v1370_v49  ;;  %1095 = vmatpush3.bf16.msra.mxu1 %v1370_v49 }
  0x26   : > { %1097 = vmatprep.subr.bf16.mxu0 %v1215_v3  ;;  %1129 = vmatprep.subr.bf16.mxu1 %v1215_v3  ;;  %v783_v3 = vld [vmem:[%s1270_s20 + $0xb0] sm:$0xff] }
  0x28   : > { %282 = vmatmul.mubr.f32.vlgmr.msra.gmra.mrb[0].mxu0 %v203_v50  ;;  %397 = vmatmul.mubr.f32.vlgmr.msra.gmra.mrb[0].mxu1 %v775_v51 }
  0x29   : > { %1099 = vmatpush3.bf16.msra.mxu0 %v1226_v7  ;;  %1131 = vmatpush3.bf16.msra.mxu1 %v1226_v7  ;;  %v785_v7 = vld [vmem:[%s1270_s20 + $0xc0] sm:$0xff] }
  0x2a   : > { %1101 = vmatprep.subr.bf16.mxu0 %v1228_v8  ;;  %1133 = vmatprep.subr.bf16.mxu1 %v1228_v8  ;;  %v216_v8 = vld [vmem:[%s1270_s20 + $0x68] sm:$0x1] }
  0x2b   : > { %286 = vmatprep.mubr.f32.mxu0 %v206_v52  ;;  %401 = vmatprep.mubr.f32.mxu1 %v778_v53 }
  0x2c   : > { %287 = vmatmul.mubr.f32.gmra.mrb[2].mxu0 %v205_v54  ;;  %402 = vmatmul.mubr.f32.gmra.mrb[2].mxu1 %v777_v55 }
  0x2d   : > { %1103 = vmatpush3.bf16.msra.mxu0 %v1248_v13  ;;  %1135 = vmatpush3.bf16.msra.mxu1 %v1248_v13  ;;  %v804_v13 = vld [vmem:[%s1270_s20 + $0x158] sm:$0xff] }
  0x2e   : > { %1105 = vmatprep.subr.bf16.mxu0 %v1253_v14  ;;  %1137 = vmatprep.subr.bf16.mxu1 %v1253_v14  ;;  %v789_v14 = vld [vmem:[%s1270_s20 + $0xe0] sm:$0xff] }
  0x2f   : > { %291 = vmatprep.mubr.f32.mxu0 %v208_v56  ;;  %406 = vmatprep.mubr.f32.mxu1 %v780_v57 }
  0x30   : > { %292 = vmatmul.mubr.f32.gmra.mrb[4].mxu0 %v207_v58  ;;  %407 = vmatmul.mubr.f32.gmra.mrb[4].mxu1 %v779_v59 }
  0x31   : > { %1107 = vmatpush3.bf16.msra.mxu0 %v1274_v19  ;;  %1139 = vmatpush3.bf16.msra.mxu1 %v1274_v19  ;;  %v805_v19 = vld [vmem:[%s1270_s20 + $0x160] sm:$0xff] }
  0x32   : > { %1109 = vmatprep.subr.bf16.mxu0 %v1278_v20  ;;  %1141 = vmatprep.subr.bf16.mxu1 %v1278_v20  ;;  %v794_v20 = vld [vmem:[%s1270_s20 + $0x108] sm:$0xff] }
  0x33   : > { %296 = vmatprep.mubr.f32.mxu0 %v210_v60  ;;  %411 = vmatprep.mubr.f32.mxu1 %v782_v61 }
  0x34   : > { %297 = vmatmul.mubr.f32.gmra.mrb[6].mxu0 %v209_v62  ;;  %412 = vmatmul.mubr.f32.gmra.mrb[6].mxu1 %v781_v63 }
  0x35   : > { %1111 = vmatpush3.bf16.msra.mxu0 %v1296_v27  ;;  %1143 = vmatpush3.bf16.msra.mxu1 %v1296_v27  ;;  %v809_v27 = vld [vmem:[%s1270_s20 + $0x180] sm:$0xff] }
  0x36   : > { %1113 = vmatprep.subr.bf16.mxu0 %v1300_v28  ;;  %1145 = vmatprep.subr.bf16.mxu1 %v1300_v28  ;;  %v798_v28 = vld [vmem:[%s1270_s20 + $0x128] sm:$0xff] }
  0x37   : > { %301 = vmatprep.mubr.f32.mxu0 %v212_v0  ;;  %416 = vmatprep.mubr.f32.mxu1 %v784_v1 }
  0x38   : > { %302 = vmatmul.mubr.f32.gmra.mrb[8].mxu0 %v211_v2  ;;  %417 = vmatmul.mubr.f32.gmra.mrb[8].mxu1 %v783_v3 }
  0x39   : > { %1115 = vmatpush3.bf16.msra.mxu0 %v1316_v33  ;;  %1147 = vmatpush3.bf16.msra.mxu1 %v1316_v33  ;;  %v814_v33 = vld [vmem:[%s1270_s20 + $0x1a8] sm:$0xff] }
  0x3a   : > { %1117 = vmatprep.subr.bf16.mxu0 %v1320_v34  ;;  %1149 = vmatprep.subr.bf16.mxu1 %v1320_v34  ;;  %v799_v34 = vld [vmem:[%s1270_s20 + $0x130] sm:$0xff] }
  0x3b   : > { %306 = vmatprep.mubr.f32.mxu0 %v214_v4  ;;  %421 = vmatprep.mubr.f32.mxu1 %v786_v5 }
  0x3c   : > { %307 = vmatmul.mubr.f32.gmra.mrb[10].mxu0 %v213_v6  ;;  %422 = vmatmul.mubr.f32.gmra.mrb[10].mxu1 %v785_v7 }
  0x3d   : > { %1119 = vmatpush3.bf16.msra.mxu0 %v1336_v39  ;;  %1151 = vmatpush3.bf16.msra.mxu1 %v1336_v39  ;;  %v815_v39 = vld [vmem:[%s1270_s20 + $0x1b0] sm:$0x1]  ;;  %s1161_s20 = smul.u32 56, %s1537_s13 }
  0x3e   : > { %1121 = vmatprep.subr.bf16.mxu0 %v1340_v40  ;;  %1153 = vmatprep.subr.bf16.mxu1 %v1340_v40 }
  0x3f   : > { %311 = vmatprep.mubr.f32.mxu0 %v216_v8  ;;  %426 = vmatprep.mubr.f32.mxu1 %v788_v9  ;;  %s1496_s10 = scalar_lea.vmem %s1535_s3, %s1161_s20 }
  0x40   : > { %312 = vmatmul.mubr.f32.gmra.mrb[12].mxu0 %v215_v10  ;;  %427 = vmatmul.mubr.f32.gmra.mrb[12].mxu1 %v787_v11 }
  0x41   : > { %1123 = vmatpush3.bf16.msra.mxu0 %v1356_v45  ;;  %1155 = vmatpush3.bf16.msra.mxu1 %v1356_v45 }
  0x42   : > { %1125 = vmatprep.subr.bf16.mxu0 %v1360_v46  ;;  %1157 = vmatprep.subr.bf16.mxu1 %v1360_v46 }
  0x43   : > { %518 = vmatprep.mubr.f32.mxu0 %v790_v12  ;;  %640 = vmatprep.mubr.f32.mxu1 %v804_v13 }
  0x45   : > { %1127 = vmatpush3.bf16.msra.mxu0 %v1370_v49  ;;  %1159 = vmatpush3.bf16.msra.mxu1 %v1370_v49 }
  0x48   : > { %519 = vmatmul.mubr.f32.vlgmr.msra.gmra.mrb[14].mxu0 %v789_v14  ;;  %641 = vmatmul.mubr.f32.vlgmr.msra.gmra.mrb[14].mxu1 %v803_v15 }
  0x49   : > { %523 = vmatprep.mubr.f32.mxu0 %v792_v16  ;;  %645 = vmatprep.mubr.f32.mxu1 %v806_v17 }
  0x4c   : > { %524 = vmatmul.mubr.f32.gmra.mrb[16].mxu0 %v791_v18  ;;  %646 = vmatmul.mubr.f32.gmra.mrb[16].mxu1 %v805_v19 }
  0x4d   : > { %528 = vmatprep.mubr.f32.mxu0 %v794_v20  ;;  %650 = vmatprep.mubr.f32.mxu1 %v808_v21 }
  0x50   : > { %529 = vmatmul.mubr.f32.gmra.mrb[18].mxu0 %v793_v22  ;;  %651 = vmatmul.mubr.f32.gmra.mrb[18].mxu1 %v807_v23 }
  0x51   : > { %533 = vmatprep.mubr.f32.mxu0 %v796_v24  ;;  %655 = vmatprep.mubr.f32.mxu1 %v810_v25 }
  0x54   : > { %534 = vmatmul.mubr.f32.gmra.mrb[20].mxu0 %v795_v26  ;;  %656 = vmatmul.mubr.f32.gmra.mrb[20].mxu1 %v809_v27 }
  0x55   : > { %538 = vmatprep.mubr.f32.mxu0 %v798_v28  ;;  %660 = vmatprep.mubr.f32.mxu1 %v812_v29 }
  0x58   : > { %539 = vmatmul.mubr.f32.gmra.mrb[22].mxu0 %v797_v30  ;;  %661 = vmatmul.mubr.f32.gmra.mrb[22].mxu1 %v811_v31 }
  0x59   : > { %543 = vmatprep.mubr.f32.mxu0 %v800_v32  ;;  %665 = vmatprep.mubr.f32.mxu1 %v814_v33 }
  0x5c   : > { %544 = vmatmul.mubr.f32.gmra.mrb[24].mxu0 %v799_v34  ;;  %666 = vmatmul.mubr.f32.gmra.mrb[24].mxu1 %v813_v35  ;;  %v1490_v34 = vld [vmem:[%s1534_s2] ss:$0 sm:$0xff] }
  0x5d   : > { %548 = vmatprep.mubr.f32.mxu0 %v802_v36  ;;  %670 = vmatprep.mubr.f32.mxu1 %v816_v37 }
  0x60   : > { %549 = vmatmul.mubr.f32.gmra.mrb[26].mxu0 %v801_v38  ;;  %671 = vmatmul.mubr.f32.gmra.mrb[26].mxu1 %v815_v39 }
  0xfb   : > { %v852_v40 = vpop.f32.mrb[0].mxu0  ;;  %v905_v41 = vpop.f32.mrb[0].mxu1 }
  0xfc   : > { %v853_v42 = vpop.f32.mrb[1].mxu0  ;;  %v906_v43 = vpop.f32.mrb[1].mxu1 }
  0xfd   : > { %v854_v44 = vadd.f32 %v853_v42, %v852_v40  ;;  %v907_v45 = vadd.f32 %v906_v43, %v905_v41 }
  0xff   : > { %v432_v46 = vmax.f32 %v854_v44, %v907_v45  ;;  %v855_v47 = vpop.f32.mrb[2].mxu0  ;;  %v908_v48 = vpop.f32.mrb[2].mxu1 }
 0x100   : > { %v856_v49 = vpop.f32.mrb[3].mxu0  ;;  %v909_v50 = vpop.f32.mrb[3].mxu1 }
 0x101   : > { %v857_v51 = vadd.f32 %v856_v49, %v855_v47  ;;  %v910_v52 = vadd.f32 %v909_v50, %v908_v48 }
 0x103   : > { %v433_v53 = vmax.f32 %v857_v51, %v910_v52  ;;  %v858_v54 = vpop.f32.mrb[4].mxu0  ;;  %v911_v55 = vpop.f32.mrb[4].mxu1 }
 0x104   : > { %v859_v56 = vpop.f32.mrb[5].mxu0  ;;  %v912_v57 = vpop.f32.mrb[5].mxu1 }
 0x105   : > { %v860_v58 = vadd.f32 %v859_v56, %v858_v54  ;;  %v913_v59 = vadd.f32 %v912_v57, %v911_v55 }
 0x107   : > { %v434_v60 = vmax.f32 %v860_v58, %v913_v59  ;;  %v861_v61 = vpop.f32.mrb[6].mxu0  ;;  %v914_v62 = vpop.f32.mrb[6].mxu1 }
 0x108   : > { %v862_v63 = vpop.f32.mrb[7].mxu0  ;;  %v915_v0 = vpop.f32.mrb[7].mxu1 }
 0x109   : > { %v1462_v1 = vadd.f32 %v862_v63, %v861_v61  ;;  %v1464_v2 = vadd.f32 %v915_v0, %v914_v62 }
 0x10b   : > { %v435_v3 = vmax.f32 %v1462_v1, %v1464_v2  ;;  %v864_v4 = vpop.f32.mrb[8].mxu0  ;;  %v917_v5 = vpop.f32.mrb[8].mxu1 }
 0x10c   : > { %v865_v6 = vpop.f32.mrb[9].mxu0  ;;  %v918_v7 = vpop.f32.mrb[9].mxu1 }
 0x10d   : > { %v1468_v8 = vadd.f32 %v865_v6, %v864_v4  ;;  %v1470_v9 = vadd.f32 %v918_v7, %v917_v5 }
 0x10f   : > { %v436_v10 = vmax.f32 %v1468_v8, %v1470_v9  ;;  %v867_v11 = vpop.f32.mrb[10].mxu0  ;;  %v920_v12 = vpop.f32.mrb[10].mxu1 }
 0x110   : > { %v868_v13 = vpop.f32.mrb[11].mxu0  ;;  %v921_v14 = vpop.f32.mrb[11].mxu1 }
 0x111   : > { %v1474_v15 = vadd.f32 %v868_v13, %v867_v11  ;;  %v1476_v16 = vadd.f32 %v921_v14, %v920_v12 }
 0x113   : > { %v437_v17 = vmax.f32 %v1474_v15, %v1476_v16  ;;  %v870_v18 = vpop.f32.mrb[12].mxu0  ;;  %v923_v19 = vpop.f32.mrb[12].mxu1 }
 0x114   : > { %v871_v20 = vpop.f32.mrb[13].mxu0  ;;  %v924_v21 = vpop.f32.mrb[13].mxu1 }
 0x115   : > { %v1480_v22 = vadd.f32 %v871_v20, %v870_v18  ;;  %v1482_v23 = vadd.f32 %v924_v21, %v923_v19 }
 0x117   : > { %v438_v24 = vmax.f32 %v1480_v22, %v1482_v23 }
 0x11b   : > { %v958_v25 = vpop.f32.mrb[14].mxu0  ;;  %v1011_v26 = vpop.f32.mrb[14].mxu1 }
 0x11c   : > { %v959_v27 = vpop.f32.mrb[15].mxu0  ;;  %v1012_v28 = vpop.f32.mrb[15].mxu1 }
 0x11d   : > { %v960_v29 = vadd.f32 %v959_v27, %v958_v25  ;;  %v1013_v30 = vadd.f32 %v1012_v28, %v1011_v26 }
 0x11f   : > { %v554_v31 = vmax.f32 %v432_v46, %v960_v29  ;;  %v961_v32 = vpop.f32.mrb[16].mxu0  ;;  %v1014_v33 = vpop.f32.mrb[16].mxu1 }
 0x120   : > { %v962_v35 = vpop.f32.mrb[17].mxu0  ;;  %v1015_v36 = vpop.f32.mrb[17].mxu1 }
 0x121   : > { %v676_v37 = vmax.f32 %v554_v31, %v1013_v30  ;;  %v963_v38 = vadd.f32 %v962_v35, %v961_v32  ;;  %v1016_v39 = vadd.f32 %v1015_v36, %v1014_v33 }
 0x123   : > { %v690_v40 = vadd.f32 %v1490_v34, %v676_v37  ;;  %v555_v41 = vmax.f32 %v433_v53, %v963_v38  ;;  %v964_v42 = vpop.f32.mrb[18].mxu0  ;;  %v1017_v43 = vpop.f32.mrb[18].mxu1 }
 0x124   : > { %v965_v44 = vpop.f32.mrb[19].mxu0  ;;  %v1018_v45 = vpop.f32.mrb[19].mxu1 }
 0x125   : > { %v697_v46 = vmax.f32 %v690_v40, 0.0  ;;  %v677_v47 = vmax.f32 %v555_v41, %v1016_v39  ;;  %v966_v48 = vadd.f32 %v965_v44, %v964_v42  ;;  %v1019_v49 = vadd.f32 %v1018_v45, %v1017_v43 }
 0x127   : > { %705 = vst.msk [vmem:[%s1496_s10] sm:$0xff] %vm704_vm0, %v697_v46  ;;  %v691_v50 = vadd.f32 %v1490_v34, %v677_v47  ;;  %v556_v51 = vmax.f32 %v434_v60, %v966_v48  ;;  %v967_v52 = vpop.f32.mrb[20].mxu0  ;;  %v1020_v53 = vpop.f32.mrb[20].mxu1 }
 0x128   : > { %v968_v54 = vpop.f32.mrb[21].mxu0  ;;  %v1021_v55 = vpop.f32.mrb[21].mxu1 }
 0x129   : > { %v698_v56 = vmax.f32 %v691_v50, 0.0  ;;  %v678_v57 = vmax.f32 %v556_v51, %v1019_v49  ;;  %v969_v58 = vadd.f32 %v968_v54, %v967_v52  ;;  %v1022_v59 = vadd.f32 %v1021_v55, %v1020_v53 }
 0x12b   : > { %706 = vst.msk [vmem:[%s1496_s10 + $0x8] sm:$0xff] %vm704_vm0, %v698_v56  ;;  %v692_v61 = vadd.f32 %v1490_v34, %v678_v57  ;;  %v557_v62 = vmax.f32 %v435_v3, %v969_v58  ;;  %v970_v63 = vpop.f32.mrb[22].mxu0  ;;  %v1023_v0 = vpop.f32.mrb[22].mxu1 }
 0x12c   : > { %v971_v60 = vpop.f32.mrb[23].mxu0  ;;  %v1024_v4 = vpop.f32.mrb[23].mxu1 }
 0x12d   : > { %v699_v5 = vmax.f32 %v692_v61, 0.0  ;;  %v679_v6 = vmax.f32 %v557_v62, %v1022_v59  ;;  %v972_v7 = vadd.f32 %v971_v60, %v970_v63  ;;  %v1025_v11 = vadd.f32 %v1024_v4, %v1023_v0 }
 0x12f   : > { %707 = vst.msk [vmem:[%s1496_s10 + $0x10] sm:$0xff] %vm704_vm0, %v699_v5  ;;  %v693_v12 = vadd.f32 %v1490_v34, %v679_v6  ;;  %v558_v13 = vmax.f32 %v436_v10, %v972_v7  ;;  %v973_v14 = vpop.f32.mrb[24].mxu0  ;;  %v1026_v1 = vpop.f32.mrb[24].mxu1 }
 0x130   : > { %v974_v2 = vpop.f32.mrb[25].mxu0  ;;  %v1027_v3 = vpop.f32.mrb[25].mxu1 }
 0x131   : > { %v700_v18 = vmax.f32 %v693_v12, 0.0  ;;  %v680_v19 = vmax.f32 %v558_v13, %v1025_v11  ;;  %v975_v20 = vadd.f32 %v974_v2, %v973_v14  ;;  %v1028_v21 = vadd.f32 %v1027_v3, %v1026_v1 }
 0x133   : > { %708 = vst.msk [vmem:[%s1496_s10 + $0x18] sm:$0xff] %vm704_vm0, %v700_v18  ;;  %v694_v25 = vadd.f32 %v1490_v34, %v680_v19  ;;  %v559_v26 = vmax.f32 %v437_v17, %v975_v20  ;;  %v976_v8 = vpop.f32.mrb[26].mxu0  ;;  %v1029_v9 = vpop.f32.mrb[26].mxu1 }
 0x134   : > { %v977_v10 = vpop.f32.mrb[27].mxu0  ;;  %v1030_v27 = vpop.f32.mrb[27].mxu1 }
 0x135   : > { %v701_v28 = vmax.f32 %v694_v25, 0.0  ;;  %v681_v29 = vmax.f32 %v559_v26, %v1028_v21  ;;  %v978_v30 = vadd.f32 %v977_v10, %v976_v8  ;;  %v1031_v31 = vadd.f32 %v1030_v27, %v1029_v9 }
 0x137   : > { %709 = vst.msk [vmem:[%s1496_s10 + $0x20] sm:$0xff] %vm704_vm0, %v701_v28  ;;  %v695_v32 = vadd.f32 %v1490_v34, %v681_v29  ;;  %v560_v33 = vmax.f32 %v438_v24, %v978_v30 }
 0x139   : > { %v702_v35 = vmax.f32 %v695_v32, 0.0  ;;  %v682_v15 = vmax.f32 %v560_v33, %v1031_v31 }
 0x13b   : > { %710 = vst.msk [vmem:[%s1496_s10 + $0x28] sm:$0xff] %vm704_vm0, %v702_v35  ;;  %v696_v16 = vadd.f32 %v1490_v34, %v682_v15 }
 0x13d   : > { %v703_v17 = vmax.f32 %v696_v16, 0.0 }
 0x13f   : > { %712 = vst.msk [vmem:[%s1496_s10 + $0x30] sm:$0x1] %vm711_vm1, %v703_v17 }
 0x140 PF: > { %s13_s12 = sadd.s32 1, %s1176_s12  }
 0x141   : > { %p10_p4 = scmp.ge.s32.totalorder %s13_s12, 4  }
 0x143   :  { %12 = sbr.rel (!%p10_p4) target bundleno = 1 (0x1), region = 65 }

// kernel: cnn_forward.5
= control target key start
LH: loop header
LB: loop body
LE: loop exit
PB: predicated region body
PF: predicated region fallthrough
CT: control target
= control target key end

     0   :  { %v1264_v43 = vmov 1983009808   ;;  %v230_v45 = vlaneseq  ;;  %s1932_s0 = inlined_call_operand.vmem [shape: f32[2,1568], index: 0, kind: input, shape index: {}]   ;;  %s1933_s1 = inlined_call_operand.vmem [shape: f32[1568,10], index: 1, kind: input, shape index: {}]   ;;  %s1934_s2 = inlined_call_operand.vmem [shape: f32[1,10], index: 2, kind: input, shape index: {}]   ;;  %s1935_s3 = inlined_call_operand.hbm [shape: f32[2,10], index: 3, kind: output, shape index: {}]  }
   0x1   :  { %v35_v0 = vld [vmem:[%s1933_s1 + $0x80] sm:$0xff]  ;;  %v36_v1 = vld [vmem:[%s1933_s1 + $0x88] sm:$0xff]  ;;  %v37_v11 = vld [vmem:[%s1933_s1 + $0x90] sm:$0xff]  ;;  %v228_v44 = vunpack.c.l.s4 %v1264_v43 }
   0x2   :  { %v19_v2 = vld [vmem:[%s1933_s1] sm:$0xff]  ;;  %v1034_v3 = vpack.c.bf16 %v36_v1, %v35_v0  ;;  %v20_v4 = vld [vmem:[%s1933_s1 + $0x8] sm:$0xff]  ;;  %v38_v13 = vld [vmem:[%s1933_s1 + $0x98] sm:$0xff]  ;;  %v231_v60 = vshrl.u32 %v230_v45, 7 }
   0x3   :  { %v67_v5 = vld [vmem:[%s1933_s1 + $0x180] sm:$0xff]  ;;  %v68_v6 = vld [vmem:[%s1933_s1 + $0x188] sm:$0xff]  ;;  %v1036_v7 = vpack.c.bf16 %v20_v4, %v19_v2  ;;  %v21_v14 = vld [vmem:[%s1933_s1 + $0x10] sm:$0xff]  ;;  %v1038_v16 = vpack.c.bf16 %v38_v13, %v37_v11  ;;  %v229_v59 = vunpack.c.0.s8 %v228_v44 }
   0x4   :  { %v1066_v8 = vpack.c.bf16 %v68_v6, %v67_v5  ;;  %v51_v9 = vld [vmem:[%s1933_s1 + $0x100] sm:$0xff]  ;;  %v52_v10 = vld [vmem:[%s1933_s1 + $0x108] sm:$0xff]  ;;  %1035 = vmatprep.subr.bf16.mxu0 %v1034_v3  ;;  %v22_v15 = vld [vmem:[%s1933_s1 + $0x18] sm:$0xff] }
   0x5   :  { %v1068_v12 = vpack.c.bf16 %v52_v10, %v51_v9  ;;  %1037 = vmatpush3.bf16.msra.mxu0 %v1036_v7  ;;  %v1040_v17 = vpack.c.bf16 %v22_v15, %v21_v14  ;;  %v69_v18 = vld [vmem:[%s1933_s1 + $0x190] sm:$0xff]  ;;  %v70_v19 = vld [vmem:[%s1933_s1 + $0x198] sm:$0xff]  ;;  %v39_v23 = vld [vmem:[%s1933_s1 + $0xa0] sm:$0xff]  ;;  %v1433_v10 = vsub.s32 %v229_v59, %v231_v60 }
   0x6   :  { %1067 = vmatprep.subr.bf16.mxu1 %v1066_v8  ;;  %v53_v20 = vld [vmem:[%s1933_s1 + $0x110] sm:$0xff]  ;;  %v1070_v21 = vpack.c.bf16 %v70_v19, %v69_v18  ;;  %v54_v22 = vld [vmem:[%s1933_s1 + $0x118] sm:$0xff]  ;;  %v40_v24 = vld [vmem:[%s1933_s1 + $0xa8] sm:$0xff]  ;;  %1039 = vmatprep.subr.bf16.mxu0 %v1038_v16 }
   0x7   :  { %1069 = vmatpush3.bf16.msra.mxu1 %v1068_v12  ;;  %v1072_v25 = vpack.c.bf16 %v54_v22, %v53_v20  ;;  %v1042_v26 = vpack.c.bf16 %v40_v24, %v39_v23  ;;  %v23_v27 = vld [vmem:[%s1933_s1 + $0x20] sm:$0xff]  ;;  %v24_v28 = vld [vmem:[%s1933_s1 + $0x28] sm:$0xff]  ;;  %v41_v35 = vld [vmem:[%s1933_s1 + $0xb0] sm:$0xff] }
   0x8   :  { %v71_v29 = vld [vmem:[%s1933_s1 + $0x1a0] sm:$0xff]  ;;  %1071 = vmatprep.subr.bf16.mxu1 %v1070_v21  ;;  %v72_v30 = vld [vmem:[%s1933_s1 + $0x1a8] sm:$0xff]  ;;  %v1044_v33 = vpack.c.bf16 %v24_v28, %v23_v27  ;;  %v42_v36 = vld [vmem:[%s1933_s1 + $0xb8] sm:$0xff] }
   0x9   :  { %v55_v31 = vld [vmem:[%s1933_s1 + $0x120] sm:$0xff]  ;;  %v56_v32 = vld [vmem:[%s1933_s1 + $0x128] sm:$0xff]  ;;  %1041 = vmatpush3.bf16.msra.mxu0 %v1040_v17  ;;  %v1074_v34 = vpack.c.bf16 %v72_v30, %v71_v29  ;;  %v25_v37 = vld [vmem:[%s1933_s1 + $0x30] sm:$0xff]  ;;  %v1046_v39 = vpack.c.bf16 %v42_v36, %v41_v35 }
   0xa   :  { %1043 = vmatprep.subr.bf16.mxu0 %v1042_v26  ;;  %v1076_v38 = vpack.c.bf16 %v56_v32, %v55_v31  ;;  %v26_v40 = vld [vmem:[%s1933_s1 + $0x38] sm:$0xff]  ;;  %v73_v41 = vld [vmem:[%s1933_s1 + $0x1b0] sm:$0xff]  ;;  %v43_v49 = vld [vmem:[%s1933_s1 + $0xc0] sm:$0xff] }
   0xb   :  { %1073 = vmatpush3.bf16.msra.mxu1 %v1072_v25  ;;  %v74_v42 = vld [vmem:[%s1933_s1 + $0x1b8] sm:$0xff]  ;;  %v57_v47 = vld [vmem:[%s1933_s1 + $0x130] sm:$0xff]  ;;  %v44_v50 = vld [vmem:[%s1933_s1 + $0xc8] sm:$0xff]  ;;  %v1048_v51 = vpack.c.bf16 %v26_v40, %v25_v37 }
   0xc   :  { %1075 = vmatprep.subr.bf16.mxu1 %v1074_v34  ;;  %v1078_v46 = vpack.c.bf16 %v74_v42, %v73_v41  ;;  %v58_v48 = vld [vmem:[%s1933_s1 + $0x138] sm:$0xff]  ;;  %v75_v52 = vld [vmem:[%s1933_s1 + $0x1c0] sm:$0xff]  ;;  %v76_v53 = vld [vmem:[%s1933_s1 + $0x1c8] sm:$0xff]  ;;  %v1050_v55 = vpack.c.bf16 %v44_v50, %v43_v49 }
   0xd   :  { %1045 = vmatpush3.bf16.msra.mxu0 %v1044_v33  ;;  %v1080_v54 = vpack.c.bf16 %v58_v48, %v57_v47  ;;  %v27_v56 = vld [vmem:[%s1933_s1 + $0x40] sm:$0xff]  ;;  %v28_v57 = vld [vmem:[%s1933_s1 + $0x48] sm:$0xff]  ;;  %v1082_v61 = vpack.c.bf16 %v76_v53, %v75_v52  ;;  %v45_v63 = vld [vmem:[%s1933_s1 + $0xd0] sm:$0xff] }
   0xe   :  { %1047 = vmatprep.subr.bf16.mxu0 %v1046_v39  ;;  %v59_v58 = vld [vmem:[%s1933_s1 + $0x140] sm:$0xff]  ;;  %v60_v62 = vld [vmem:[%s1933_s1 + $0x148] sm:$0xff]  ;;  %v46_v0 = vld [vmem:[%s1933_s1 + $0xd8] sm:$0xff]  ;;  %v1052_v3 = vpack.c.bf16 %v28_v57, %v27_v56 }
   0xf   :  { %1077 = vmatpush3.bf16.msra.mxu1 %v1076_v38  ;;  %v77_v1 = vld [vmem:[%s1933_s1 + $0x1d0] sm:$0xff]  ;;  %v78_v2 = vld [vmem:[%s1933_s1 + $0x1d8] sm:$0xff]  ;;  %v1084_v5 = vpack.c.bf16 %v60_v62, %v59_v58  ;;  %v1054_v6 = vpack.c.bf16 %v46_v0, %v45_v63  ;;  %v47_v12 = vld [vmem:[%s1933_s1 + $0xe0] sm:$0xff] }
  0x10   :  { %1079 = vmatprep.subr.bf16.mxu1 %v1078_v46  ;;  %v29_v4 = vld [vmem:[%s1933_s1 + $0x50] sm:$0xff]  ;;  %v30_v7 = vld [vmem:[%s1933_s1 + $0x58] sm:$0xff]  ;;  %v1086_v11 = vpack.c.bf16 %v78_v2, %v77_v1  ;;  %v48_v13 = vld [vmem:[%s1933_s1 + $0xe8] sm:$0xff] }
  0x11   :  { %1049 = vmatpush3.bf16.msra.mxu0 %v1048_v51  ;;  %v61_v8 = vld [vmem:[%s1933_s1 + $0x150] sm:$0xff]  ;;  %v62_v9 = vld [vmem:[%s1933_s1 + $0x158] sm:$0xff]  ;;  %v79_v14 = vld [vmem:[%s1933_s1 + $0x1e0] sm:$0xff]  ;;  %v1056_v16 = vpack.c.bf16 %v30_v7, %v29_v4  ;;  %v1058_v19 = vpack.c.bf16 %v48_v13, %v47_v12 }
  0x12   :  { %1051 = vmatprep.subr.bf16.mxu0 %v1050_v55  ;;  %v80_v15 = vld [vmem:[%s1933_s1 + $0x1e8] sm:$0xff]  ;;  %v1088_v17 = vpack.c.bf16 %v62_v9, %v61_v8  ;;  %v15_v18 = vld [vmem:[%s1932_s0] sm:$0xff]  ;;  %v49_v27 = vld [vmem:[%s1933_s1 + $0xf0] sm:$0xff] }
  0x13   :  { %1081 = vmatpush3.bf16.msra.mxu1 %v1080_v54  ;;  %v31_v20 = vld [vmem:[%s1933_s1 + $0x60] sm:$0xff]  ;;  %v32_v21 = vld [vmem:[%s1933_s1 + $0x68] sm:$0xff]  ;;  %v233_v23 = vrot.slane %v15_v18, %v1433_v10  ;;  %v226_v24 = vcombine.high %v15_v18, %v15_v18  ;;  %v1090_v25 = vpack.c.bf16 %v80_v15, %v79_v14  ;;  %v50_v28 = vld [vmem:[%s1933_s1 + $0xf8] sm:$0xff] }
  0x14   :  { %1083 = vmatprep.subr.bf16.mxu1 %v1082_v61  ;;  %v63_v22 = vld [vmem:[%s1933_s1 + $0x160] sm:$0xff]  ;;  %v64_v26 = vld [vmem:[%s1933_s1 + $0x168] sm:$0xff]  ;;  %v81_v29 = vld [vmem:[%s1933_s1 + $0x1f0] sm:$0xff]  ;;  %v1060_v33 = vpack.c.bf16 %v32_v21, %v31_v20  ;;  %v1062_v35 = vpack.c.bf16 %v50_v28, %v49_v27 }
  0x15   :  { %1053 = vmatpush3.bf16.msra.mxu0 %v1052_v3  ;;  %v82_v30 = vld [vmem:[%s1933_s1 + $0x1f8] sm:$0xff]  ;;  %v241_v31 = vcombine.high %v233_v23, %v233_v23  ;;  %v240_v32 = vrot.slane %v226_v24, %v1433_v10  ;;  %v1092_v34 = vpack.c.bf16 %v64_v26, %v63_v22  ;;  %v33_v36 = vld [vmem:[%s1933_s1 + $0x70] sm:$0xff]  ;;  %v99_v42 = vld [vmem:[%s1933_s1 + $0x280] sm:$0xff] }
  0x16   :  { %1055 = vmatprep.subr.bf16.mxu0 %v1054_v6  ;;  %v34_v37 = vld [vmem:[%s1933_s1 + $0x78] sm:$0xff]  ;;  %v65_v38 = vld [vmem:[%s1933_s1 + $0x170] sm:$0xff]  ;;  %v1094_v40 = vpack.c.bf16 %v82_v30, %v81_v29  ;;  %v100_v43 = vld [vmem:[%s1933_s1 + $0x288] sm:$0xff] }
  0x17   :  { %1085 = vmatpush3.bf16.msra.mxu1 %v1084_v5  ;;  %v242_v39 = vcombine.high %v240_v32, %v240_v32  ;;  %363 = vmatprep.mubr.f32.mxu0 %v241_v31  ;;  %v66_v41 = vld [vmem:[%s1933_s1 + $0x178] sm:$0xff]  ;;  %v131_v44 = vld [vmem:[%s1933_s1 + $0x380] sm:$0xff]  ;;  %v132_v45 = vld [vmem:[%s1933_s1 + $0x388] sm:$0xff]  ;;  %v1064_v46 = vpack.c.bf16 %v34_v37, %v33_v36  ;;  %v1098_v48 = vpack.c.bf16 %v100_v43, %v99_v42 }
  0x18   :  { %1087 = vmatprep.subr.bf16.mxu1 %v1086_v11  ;;  %v1096_v47 = vpack.c.bf16 %v66_v41, %v65_v38  ;;  %v83_v49 = vld [vmem:[%s1933_s1 + $0x200] sm:$0xff]  ;;  %v84_v50 = vld [vmem:[%s1933_s1 + $0x208] sm:$0xff]  ;;  %v1130_v52 = vpack.c.bf16 %v132_v45, %v131_v44  ;;  %v101_v54 = vld [vmem:[%s1933_s1 + $0x290] sm:$0xff] }
  0x19   :  { %1057 = vmatpush3.bf16.msra.mxu0 %v1056_v16  ;;  %433 = vmatprep.mubr.f32.mxu1 %v242_v39  ;;  %v115_v51 = vld [vmem:[%s1933_s1 + $0x300] sm:$0xff]  ;;  %v116_v53 = vld [vmem:[%s1933_s1 + $0x308] sm:$0xff]  ;;  %v102_v55 = vld [vmem:[%s1933_s1 + $0x298] sm:$0xff]  ;;  %v1100_v58 = vpack.c.bf16 %v84_v50, %v83_v49 }
  0x1a   :  { %1059 = vmatprep.subr.bf16.mxu0 %v1058_v19  ;;  %v133_v56 = vld [vmem:[%s1933_s1 + $0x390] sm:$0xff]  ;;  %v134_v57 = vld [vmem:[%s1933_s1 + $0x398] sm:$0xff]  ;;  %v1132_v59 = vpack.c.bf16 %v116_v53, %v115_v51  ;;  %v1102_v60 = vpack.c.bf16 %v102_v55, %v101_v54  ;;  %v103_v2 = vld [vmem:[%s1933_s1 + $0x2a0] sm:$0xff] }
  0x1b   :  { %1089 = vmatpush3.bf16.msra.mxu1 %v1088_v17  ;;  %v85_v61 = vld [vmem:[%s1933_s1 + $0x210] sm:$0xff]  ;;  %v86_v62 = vld [vmem:[%s1933_s1 + $0x218] sm:$0xff]  ;;  %v1134_v0 = vpack.c.bf16 %v134_v57, %v133_v56  ;;  %v104_v3 = vld [vmem:[%s1933_s1 + $0x2a8] sm:$0xff] }
  0x1c   :  { %1091 = vmatprep.subr.bf16.mxu1 %v1090_v25  ;;  %v117_v63 = vld [vmem:[%s1933_s1 + $0x310] sm:$0xff]  ;;  %v118_v1 = vld [vmem:[%s1933_s1 + $0x318] sm:$0xff]  ;;  %v135_v4 = vld [vmem:[%s1933_s1 + $0x3a0] sm:$0xff]  ;;  %v1104_v6 = vpack.c.bf16 %v86_v62, %v85_v61  ;;  %v1106_v8 = vpack.c.bf16 %v104_v3, %v103_v2 }
  0x1d   :  { %1061 = vmatpush3.bf16.msra.mxu0 %v1060_v33  ;;  %v136_v5 = vld [vmem:[%s1933_s1 + $0x3a8] sm:$0xff]  ;;  %v1136_v7 = vpack.c.bf16 %v118_v1, %v117_v63  ;;  %v87_v9 = vld [vmem:[%s1933_s1 + $0x220] sm:$0xff]  ;;  %v105_v15 = vld [vmem:[%s1933_s1 + $0x2b0] sm:$0xff] }
  0x1e   :  { %1063 = vmatprep.subr.bf16.mxu0 %v1062_v35  ;;  %v88_v11 = vld [vmem:[%s1933_s1 + $0x228] sm:$0xff]  ;;  %v119_v12 = vld [vmem:[%s1933_s1 + $0x320] sm:$0xff]  ;;  %v1138_v13 = vpack.c.bf16 %v136_v5, %v135_v4  ;;  %v106_v16 = vld [vmem:[%s1933_s1 + $0x2b8] sm:$0xff] }
  0x1f   :  { %1093 = vmatpush3.bf16.msra.mxu1 %v1092_v34  ;;  %v120_v14 = vld [vmem:[%s1933_s1 + $0x328] sm:$0xff]  ;;  %v137_v17 = vld [vmem:[%s1933_s1 + $0x3b0] sm:$0xff]  ;;  %v138_v18 = vld [vmem:[%s1933_s1 + $0x3b8] sm:$0xff]  ;;  %v1108_v19 = vpack.c.bf16 %v88_v11, %v87_v9  ;;  %v1110_v22 = vpack.c.bf16 %v106_v16, %v105_v15 }
  0x20   :  { %1095 = vmatprep.subr.bf16.mxu1 %v1094_v40  ;;  %v89_v20 = vld [vmem:[%s1933_s1 + $0x230] sm:$0xff]  ;;  %v1140_v21 = vpack.c.bf16 %v120_v14, %v119_v12  ;;  %v122_v25 = vld [vmem:[%s1933_s1 + $0x338] sm:$0xff]  ;;  %v1142_v26 = vpack.c.bf16 %v138_v18, %v137_v17  ;;  %v107_v27 = vld [vmem:[%s1933_s1 + $0x2c0] sm:$0xff] }
  0x21   :  { %1065 = vmatpush3.bf16.msra.mxu0 %v1064_v46  ;;  %v121_v24 = vld [vmem:[%s1933_s1 + $0x330] sm:$0xff]  ;;  %v108_v28 = vld [vmem:[%s1933_s1 + $0x2c8] sm:$0xff]  ;;  %v139_v30 = vld [vmem:[%s1933_s1 + $0x3c0] sm:$0xff] }
  0x22   :  { %1099 = vmatprep.subr.bf16.mxu0 %v1098_v48  ;;  %v16_v29 = vld [vmem:[%s1932_s0 + $0x8] sm:$0xff]  ;;  %v1144_v35 = vpack.c.bf16 %v122_v25, %v121_v24  ;;  %v1114_v36 = vpack.c.bf16 %v108_v28, %v107_v27  ;;  %v91_v37 = vld [vmem:[%s1933_s1 + $0x240] sm:$0xff]  ;;  %v109_v44 = vld [vmem:[%s1933_s1 + $0x2d0] sm:$0xff] }
  0x23   :  { %1097 = vmatpush3.bf16.msra.mxu1 %v1096_v47  ;;  %v140_v31 = vld [vmem:[%s1933_s1 + $0x3c8] sm:$0xff]  ;;  %v243_v33 = vcombine.high %v16_v29, %v16_v29  ;;  %v123_v39 = vld [vmem:[%s1933_s1 + $0x340] sm:$0xff]  ;;  %v110_v45 = vld [vmem:[%s1933_s1 + $0x2d8] sm:$0xff] }
  0x24   :  { %1131 = vmatprep.subr.bf16.mxu1 %v1130_v52  ;;  %364 = vmatmul.mubr.f32.vlgmr.msra.gmra.mrb[0].mxu0 %v233_v23  ;;  %v90_v23 = vld [vmem:[%s1933_s1 + $0x238] sm:$0xff]  ;;  %v92_v38 = vld [vmem:[%s1933_s1 + $0x248] sm:$0xff]  ;;  %v1146_v42 = vpack.c.bf16 %v140_v31, %v139_v30  ;;  %v141_v46 = vld [vmem:[%s1933_s1 + $0x3d0] sm:$0xff]  ;;  %v1118_v51 = vpack.c.bf16 %v110_v45, %v109_v44 }
  0x25   :  { %1101 = vmatpush3.bf16.msra.mxu0 %v1100_v58  ;;  %v1112_v34 = vpack.c.bf16 %v90_v23, %v89_v20  ;;  %v1614_v41 = vrot.slane %v243_v33, %v1433_v10  ;;  %v124_v43 = vld [vmem:[%s1933_s1 + $0x348] sm:$0xff]  ;;  %v142_v47 = vld [vmem:[%s1933_s1 + $0x3d8] sm:$0xff]  ;;  %v1116_v49 = vpack.c.bf16 %v92_v38, %v91_v37  ;;  %v93_v52 = vld [vmem:[%s1933_s1 + $0x250] sm:$0xff] }
  0x26   :  { %434 = vmatmul.mubr.f32.vlgmr.msra.gmra.mrb[0].mxu1 %v240_v32  ;;  %1103 = vmatprep.subr.bf16.mxu0 %v1102_v60  ;;  %v1600_v32 = vrot.slane %v16_v29, %v1433_v10  ;;  %v1148_v50 = vpack.c.bf16 %v124_v43, %v123_v39  ;;  %v94_v53 = vld [vmem:[%s1933_s1 + $0x258] sm:$0xff]  ;;  %v125_v54 = vld [vmem:[%s1933_s1 + $0x350] sm:$0xff]  ;;  %v1150_v55 = vpack.c.bf16 %v142_v47, %v141_v46  ;;  %v111_v57 = vld [vmem:[%s1933_s1 + $0x2e0] sm:$0xff] }
  0x27   :  { %1133 = vmatpush3.bf16.msra.mxu1 %v1132_v59  ;;  %v259_v48 = vcombine.high %v1614_v41, %v1614_v41  ;;  %v126_v56 = vld [vmem:[%s1933_s1 + $0x358] sm:$0xff]  ;;  %v112_v58 = vld [vmem:[%s1933_s1 + $0x2e8] sm:$0xff]  ;;  %v143_v59 = vld [vmem:[%s1933_s1 + $0x3e0] sm:$0xff]  ;;  %v1120_v61 = vpack.c.bf16 %v94_v53, %v93_v52 }
  0x28   :  { %1135 = vmatprep.subr.bf16.mxu1 %v1134_v0  ;;  %v258_v40 = vcombine.high %v1600_v32, %v1600_v32  ;;  %v144_v60 = vld [vmem:[%s1933_s1 + $0x3e8] sm:$0xff]  ;;  %v1152_v62 = vpack.c.bf16 %v126_v56, %v125_v54  ;;  %v1122_v63 = vpack.c.bf16 %v112_v58, %v111_v57  ;;  %v95_v0 = vld [vmem:[%s1933_s1 + $0x260] sm:$0xff]  ;;  %v113_v5 = vld [vmem:[%s1933_s1 + $0x2f0] sm:$0xff] }
  0x29   :  { %1105 = vmatpush3.bf16.msra.mxu0 %v1104_v6  ;;  %573 = vmatprep.mubr.f32.mxu1 %v259_v48  ;;  %v96_v1 = vld [vmem:[%s1933_s1 + $0x268] sm:$0xff]  ;;  %v127_v2 = vld [vmem:[%s1933_s1 + $0x360] sm:$0xff]  ;;  %v1154_v3 = vpack.c.bf16 %v144_v60, %v143_v59  ;;  %v114_v6 = vld [vmem:[%s1933_s1 + $0x2f8] sm:$0xff] }
  0x2a   :  { %1107 = vmatprep.subr.bf16.mxu0 %v1106_v8  ;;  %503 = vmatprep.mubr.f32.mxu0 %v258_v40  ;;  %v128_v4 = vld [vmem:[%s1933_s1 + $0x368] sm:$0xff]  ;;  %v146_v8 = vld [vmem:[%s1933_s1 + $0x3f8] sm:$0xff]  ;;  %v1124_v9 = vpack.c.bf16 %v96_v1, %v95_v0  ;;  %v1126_v12 = vpack.c.bf16 %v114_v6, %v113_v5  ;;  %v129_v15 = vld [vmem:[%s1933_s1 + $0x370] sm:$0xff] }
  0x2b   :  { %1137 = vmatpush3.bf16.msra.mxu1 %v1136_v7  ;;  %v145_v7 = vld [vmem:[%s1933_s1 + $0x3f0] sm:$0xff]  ;;  %v1156_v11 = vpack.c.bf16 %v128_v4, %v127_v2  ;;  %v98_v14 = vld [vmem:[%s1933_s1 + $0x278] sm:$0xff]  ;;  %v163_v18 = vld [vmem:[%s1933_s1 + $0x480] sm:$0xff] }
  0x2c   :  { %1139 = vmatprep.subr.bf16.mxu1 %v1138_v13  ;;  %v97_v13 = vld [vmem:[%s1933_s1 + $0x270] sm:$0xff]  ;;  %v1158_v16 = vpack.c.bf16 %v146_v8, %v145_v7  ;;  %v130_v17 = vld [vmem:[%s1933_s1 + $0x378] sm:$0xff]  ;;  %v195_v20 = vld [vmem:[%s1933_s1 + $0x580] sm:$0xff] }
  0x2d   :  { %1109 = vmatpush3.bf16.msra.mxu0 %v1108_v19  ;;  %v164_v19 = vld [vmem:[%s1933_s1 + $0x488] sm:$0xff]  ;;  %v147_v23 = vld [vmem:[%s1933_s1 + $0x400] sm:$0xff]  ;;  %v1160_v24 = vpack.c.bf16 %v130_v17, %v129_v15  ;;  %v165_v30 = vld [vmem:[%s1933_s1 + $0x490] sm:$0xff] }
  0x2e   :  { %1111 = vmatprep.subr.bf16.mxu0 %v1110_v22  ;;  %v1128_v22 = vpack.c.bf16 %v98_v14, %v97_v13  ;;  %v1162_v25 = vpack.c.bf16 %v164_v19, %v163_v18  ;;  %v179_v27 = vld [vmem:[%s1933_s1 + $0x500] sm:$0xff]  ;;  %v180_v28 = vld [vmem:[%s1933_s1 + $0x508] sm:$0xff]  ;;  %v166_v31 = vld [vmem:[%s1933_s1 + $0x498] sm:$0xff] }
  0x2f   :  { %1141 = vmatpush3.bf16.msra.mxu1 %v1140_v21  ;;  %v196_v21 = vld [vmem:[%s1933_s1 + $0x588] sm:$0xff]  ;;  %v197_v33 = vld [vmem:[%s1933_s1 + $0x590] sm:$0xff]  ;;  %v1166_v38 = vpack.c.bf16 %v166_v31, %v165_v30  ;;  %v150_v40 = vld [vmem:[%s1933_s1 + $0x418] sm:$0xff] }
  0x30   :  { %1143 = vmatprep.subr.bf16.mxu1 %v1142_v26  ;;  %v148_v26 = vld [vmem:[%s1933_s1 + $0x408] sm:$0xff]  ;;  %v1194_v29 = vpack.c.bf16 %v196_v21, %v195_v20  ;;  %v17_v37 = vld [vmem:[%s1932_s0 + $0x10] sm:$0xff]  ;;  %v182_v46 = vld [vmem:[%s1933_s1 + $0x518] sm:$0xff] }
  0x31   :  { %1113 = vmatpush3.bf16.msra.mxu0 %v1112_v34  ;;  %v198_v34 = vld [vmem:[%s1933_s1 + $0x598] sm:$0xff]  ;;  %v149_v39 = vld [vmem:[%s1933_s1 + $0x410] sm:$0xff]  ;;  %v1742_v43 = vrot.slane %v17_v37, %v1433_v10  ;;  %v260_v44 = vcombine.high %v17_v37, %v17_v37  ;;  %v167_v47 = vld [vmem:[%s1933_s1 + $0x4a0] sm:$0xff] }
  0x32   :  { %1115 = vmatprep.subr.bf16.mxu0 %v1114_v36  ;;  %v1196_v36 = vpack.c.bf16 %v180_v28, %v179_v27  ;;  %v1198_v45 = vpack.c.bf16 %v198_v34, %v197_v33  ;;  %v168_v48 = vld [vmem:[%s1933_s1 + $0x4a8] sm:$0xff] }
  0x33   :  { %1145 = vmatpush3.bf16.msra.mxu1 %v1144_v35  ;;  %v1164_v35 = vpack.c.bf16 %v148_v26, %v147_v23  ;;  %v1763_v52 = vrot.slane %v260_v44, %v1433_v10 }
  0x34   :  { %1147 = vmatprep.subr.bf16.mxu1 %v1146_v42  ;;  %v181_v42 = vld [vmem:[%s1933_s1 + $0x510] sm:$0xff] }
  0x35   :  { %1117 = vmatpush3.bf16.msra.mxu0 %v1116_v49  ;;  %v199_v49 = vld [vmem:[%s1933_s1 + $0x5a0] sm:$0xff] }
  0x36   :  { %1119 = vmatprep.subr.bf16.mxu0 %v1118_v51  ;;  %v275_v51 = vcombine.high %v1742_v43, %v1742_v43 }
  0x37   :  { %1149 = vmatpush3.bf16.msra.mxu1 %v1148_v50  ;;  %v200_v50 = vld [vmem:[%s1933_s1 + $0x5a8] sm:$0xff] }
  0x38   :  { %1151 = vmatprep.subr.bf16.mxu1 %v1150_v55 }
  0x39   :  { %1121 = vmatpush3.bf16.msra.mxu0 %v1120_v61 }
  0x3a   :  { %1123 = vmatprep.subr.bf16.mxu0 %v1122_v63 }
  0x3b   :  { %1153 = vmatpush3.bf16.msra.mxu1 %v1152_v62 }
  0x3c   :  { %1155 = vmatprep.subr.bf16.mxu1 %v1154_v3 }
  0x3d   :  { %1125 = vmatpush3.bf16.msra.mxu0 %v1124_v9 }
  0x3e   :  { %1127 = vmatprep.subr.bf16.mxu0 %v1126_v12 }
  0x3f   :  { %1157 = vmatpush3.bf16.msra.mxu1 %v1156_v11 }
  0x40   :  { %1159 = vmatprep.subr.bf16.mxu1 %v1158_v16 }
  0x41   :  { %1129 = vmatpush3.bf16.msra.mxu0 %v1128_v22 }
  0x42   :  { %1163 = vmatprep.subr.bf16.mxu0 %v1162_v25 }
  0x43   :  { %1161 = vmatpush3.bf16.msra.mxu1 %v1160_v24 }
  0x44   :  { %1195 = vmatprep.subr.bf16.mxu1 %v1194_v29  ;;  %504 = vmatmul.mubr.f32.vlgmr.msra.gmra.mrb[2].mxu0 %v1600_v32 }
  0x45   :  { %8 = vsyncpa [#allocation3], 0  ;;  %1165 = vmatpush3.bf16.msra.mxu0 %v1164_v35  ;;  %v1168_v53 = vpack.c.bf16 %v150_v40, %v149_v39  ;;  %v1200_v32 = vpack.c.bf16 %v182_v46, %v181_v42  ;;  %v1170_v54 = vpack.c.bf16 %v168_v48, %v167_v47  ;;  %v151_v55 = vld [vmem:[%s1933_s1 + $0x420] sm:$0xff]  ;;  %v152_v56 = vld [vmem:[%s1933_s1 + $0x428] sm:$0xff]  ;;  %v1202_v57 = vpack.c.bf16 %v200_v50, %v199_v49 }
  0x46   :  { %574 = vmatmul.mubr.f32.vlgmr.msra.gmra.mrb[2].mxu1 %v1614_v41  ;;  %1167 = vmatprep.subr.bf16.mxu0 %v1166_v38  ;;  %v183_v10 = vld [vmem:[%s1933_s1 + $0x520] sm:$0xff]  ;;  %v276_v41 = vcombine.high %v1763_v52, %v1763_v52  ;;  %v184_v58 = vld [vmem:[%s1933_s1 + $0x528] sm:$0xff]  ;;  %v169_v59 = vld [vmem:[%s1933_s1 + $0x4b0] sm:$0xff]  ;;  %v1172_v63 = vpack.c.bf16 %v152_v56, %v151_v55  ;;  %vm1266_vm0 = vmmov 0   ;;  %vm296_vm1 = vcmask 261120  }
  0x47   :  { %1197 = vmatpush3.bf16.msra.mxu1 %v1196_v36  ;;  %v170_v60 = vld [vmem:[%s1933_s1 + $0x4b8] sm:$0xff]  ;;  %643 = vmatprep.mubr.f32.mxu0 %v275_v51  ;;  %v201_v61 = vld [vmem:[%s1933_s1 + $0x5b0] sm:$0xff]  ;;  %v1204_v0 = vpack.c.bf16 %v184_v58, %v183_v10  ;;  %v171_v7 = vld [vmem:[%s1933_s1 + $0x4c0] sm:$0xff]  ;;  %vm789_vm2 = vcmask 74752  }
  0x48   :  { %1199 = vmatprep.subr.bf16.mxu1 %v1198_v45  ;;  %v202_v62 = vld [vmem:[%s1933_s1 + $0x5b8] sm:$0xff]  ;;  %713 = vmatprep.mubr.f32.mxu1 %v276_v41  ;;  %v1174_v1 = vpack.c.bf16 %v170_v60, %v169_v59  ;;  %v153_v2 = vld [vmem:[%s1933_s1 + $0x430] sm:$0xff]  ;;  %v172_v8 = vld [vmem:[%s1933_s1 + $0x4c8] sm:$0xff] }
  0x49   :  { %1169 = vmatpush3.bf16.msra.mxu0 %v1168_v53  ;;  %v154_v3 = vld [vmem:[%s1933_s1 + $0x438] sm:$0xff]  ;;  %v185_v4 = vld [vmem:[%s1933_s1 + $0x530] sm:$0xff]  ;;  %v1206_v5 = vpack.c.bf16 %v202_v62, %v201_v61  ;;  %v203_v9 = vld [vmem:[%s1933_s1 + $0x5c0] sm:$0xff]  ;;  %v1178_v14 = vpack.c.bf16 %v172_v8, %v171_v7  ;;  %v1265_v62 = vmov 0.0|0.0  }
  0x4a   :  { %1171 = vmatprep.subr.bf16.mxu0 %v1170_v54  ;;  %v186_v6 = vld [vmem:[%s1933_s1 + $0x538] sm:$0xff]  ;;  %v204_v11 = vld [vmem:[%s1933_s1 + $0x5c8] sm:$0xff]  ;;  %v1176_v12 = vpack.c.bf16 %v154_v3, %v153_v2  ;;  %v155_v15 = vld [vmem:[%s1933_s1 + $0x440] sm:$0xff]  ;;  %v1267_v2 = vmov 0.0  }
  0x4b   :  { %1201 = vmatpush3.bf16.msra.mxu1 %v1200_v32  ;;  %v1208_v13 = vpack.c.bf16 %v186_v6, %v185_v4  ;;  %v156_v16 = vld [vmem:[%s1933_s1 + $0x448] sm:$0xff]  ;;  %v187_v17 = vld [vmem:[%s1933_s1 + $0x540] sm:$0xff]  ;;  %v1210_v18 = vpack.c.bf16 %v204_v11, %v203_v9  ;;  %v173_v20 = vld [vmem:[%s1933_s1 + $0x4d0] sm:$0xff] }
  0x4c   :  { %1203 = vmatprep.subr.bf16.mxu1 %v1202_v57  ;;  %v188_v19 = vld [vmem:[%s1933_s1 + $0x548] sm:$0xff]  ;;  %v174_v21 = vld [vmem:[%s1933_s1 + $0x4d8] sm:$0xff]  ;;  %v205_v22 = vld [vmem:[%s1933_s1 + $0x5d0] sm:$0xff]  ;;  %v1180_v24 = vpack.c.bf16 %v156_v16, %v155_v15 }
  0x4d   :  { %1173 = vmatpush3.bf16.msra.mxu0 %v1172_v63  ;;  %v206_v23 = vld [vmem:[%s1933_s1 + $0x5d8] sm:$0xff]  ;;  %v1212_v25 = vpack.c.bf16 %v188_v19, %v187_v17  ;;  %v1182_v26 = vpack.c.bf16 %v174_v21, %v173_v20  ;;  %v157_v27 = vld [vmem:[%s1933_s1 + $0x450] sm:$0xff]  ;;  %v175_v33 = vld [vmem:[%s1933_s1 + $0x4e0] sm:$0xff] }
  0x4e   :  { %1175 = vmatprep.subr.bf16.mxu0 %v1174_v1  ;;  %v158_v28 = vld [vmem:[%s1933_s1 + $0x458] sm:$0xff]  ;;  %v189_v29 = vld [vmem:[%s1933_s1 + $0x550] sm:$0xff]  ;;  %v1214_v30 = vpack.c.bf16 %v206_v23, %v205_v22  ;;  %v176_v34 = vld [vmem:[%s1933_s1 + $0x4e8] sm:$0xff] }
  0x4f   :  { %1205 = vmatpush3.bf16.msra.mxu1 %v1204_v0  ;;  %v190_v31 = vld [vmem:[%s1933_s1 + $0x558] sm:$0xff]  ;;  %v207_v35 = vld [vmem:[%s1933_s1 + $0x5e0] sm:$0xff]  ;;  %v208_v36 = vld [vmem:[%s1933_s1 + $0x5e8] sm:$0xff]  ;;  %v1184_v37 = vpack.c.bf16 %v158_v28, %v157_v27  ;;  %v1186_v39 = vpack.c.bf16 %v176_v34, %v175_v33 }
  0x50   :  { %1207 = vmatprep.subr.bf16.mxu1 %v1206_v5  ;;  %v1216_v38 = vpack.c.bf16 %v190_v31, %v189_v29  ;;  %v159_v40 = vld [vmem:[%s1933_s1 + $0x460] sm:$0xff]  ;;  %v160_v42 = vld [vmem:[%s1933_s1 + $0x468] sm:$0xff]  ;;  %v1218_v45 = vpack.c.bf16 %v208_v36, %v207_v35  ;;  %v177_v47 = vld [vmem:[%s1933_s1 + $0x4f0] sm:$0xff] }
  0x51   :  { %1177 = vmatpush3.bf16.msra.mxu0 %v1176_v12  ;;  %v191_v44 = vld [vmem:[%s1933_s1 + $0x560] sm:$0xff]  ;;  %v192_v46 = vld [vmem:[%s1933_s1 + $0x568] sm:$0xff]  ;;  %v178_v48 = vld [vmem:[%s1933_s1 + $0x4f8] sm:$0xff]  ;;  %v1188_v51 = vpack.c.bf16 %v160_v42, %v159_v40 }
  0x52   :  { %1179 = vmatprep.subr.bf16.mxu0 %v1178_v14  ;;  %v209_v49 = vld [vmem:[%s1933_s1 + $0x5f0] sm:$0xff]  ;;  %v210_v50 = vld [vmem:[%s1933_s1 + $0x5f8] sm:$0xff]  ;;  %v1220_v53 = vpack.c.bf16 %v192_v46, %v191_v44  ;;  %v1190_v32 = vpack.c.bf16 %v178_v48, %v177_v47  ;;  %v211_v59 = vld [vmem:[%s1933_s1 + $0x600] sm:$0xff] }
  0x53   :  { %1209 = vmatpush3.bf16.msra.mxu1 %v1208_v13  ;;  %v161_v54 = vld [vmem:[%s1933_s1 + $0x470] sm:$0xff]  ;;  %v162_v55 = vld [vmem:[%s1933_s1 + $0x478] sm:$0xff]  ;;  %v1222_v56 = vpack.c.bf16 %v210_v50, %v209_v49  ;;  %v212_v60 = vld [vmem:[%s1933_s1 + $0x608] sm:$0xff] }
  0x54   :  { %1211 = vmatprep.subr.bf16.mxu1 %v1210_v18  ;;  %v193_v10 = vld [vmem:[%s1933_s1 + $0x570] sm:$0xff]  ;;  %v194_v41 = vld [vmem:[%s1933_s1 + $0x578] sm:$0xff]  ;;  %v1192_v57 = vpack.c.bf16 %v162_v55, %v161_v54  ;;  %v1227_v61 = vpack.c.bf16 %v212_v60, %v211_v59 }
  0x55   :  { %1181 = vmatpush3.bf16.msra.mxu0 %v1180_v24  ;;  %v1224_v58 = vpack.c.bf16 %v194_v41, %v193_v10  ;;  %v213_v63 = vld [vmem:[%s1933_s1 + $0x610] sm:$0xff]  ;;  %v214_v0 = vld [vmem:[%s1933_s1 + $0x618] sm:$0xff] }
  0x56   :  { %1183 = vmatprep.subr.bf16.mxu0 %v1182_v26  ;;  %v1230_v1 = vpack.c.bf16 %v214_v0, %v213_v63  ;;  %v806_v3 = vld.sshfl [vmem:[%s1932_s0 + $0x18] sm:$0x3 pattern:$0x76325410]  ;;  %s1268_s0 = smov [#allocation2]  }
  0x57   :  { %1213 = vmatpush3.bf16.msra.mxu1 %v1212_v25 }
  0x58   :  { %1215 = vmatprep.subr.bf16.mxu1 %v1214_v30 }
  0x59   :  { %1185 = vmatpush3.bf16.msra.mxu0 %v1184_v37 }
  0x5a   :  { %1187 = vmatprep.subr.bf16.mxu0 %v1186_v39 }
  0x5b   :  { %1217 = vmatpush3.bf16.msra.mxu1 %v1216_v38 }
  0x5c   :  { %1219 = vmatprep.subr.bf16.mxu1 %v1218_v45 }
  0x5d   :  { %1189 = vmatpush3.bf16.msra.mxu0 %v1188_v51 }
  0x5e   :  { %1191 = vmatprep.subr.bf16.mxu0 %v1190_v32 }
  0x5f   :  { %1221 = vmatpush3.bf16.msra.mxu1 %v1220_v53 }
  0x60   :  { %1223 = vmatprep.subr.bf16.mxu1 %v1222_v56 }
  0x61   :  { %1193 = vmatpush3.bf16.msra.mxu0 %v1192_v57 }
  0x62   :  { %1226 = vmatprep.subr.bf16.mxu0 %v1265_v62 }
  0x63   :  { %1225 = vmatpush3.bf16.msra.mxu1 %v1224_v58 }
  0x64   :  { %644 = vmatmul.mubr.f32.vlgmr.msra.gmra.mrb[4].mxu0 %v1742_v43  ;;  %v805_v43 = vld [vmem:[%s1934_s2] ss:$0 sm:$0xff]  ;;  %s797_s2 = sshll.u32 %s1268_s0, 4  ;;  %s798_s2 = int_to_ptr.vmem [resolvable:$true] %s797_s2 }
  0x65   :  { %1228 = vmatpush3.bf16.msra.mxu0 %v1227_v61  ;;  %1031 = vmatprep.mubr.msk.f32.mxu0 %vm1266_vm0, %v1267_v2  ;;  %s1240_s8 = scalar_lea.vmem %s798_s2, 32  ;;  %p1245_p1 = scmp.lt.s32.totalorder %s798_s2, %s798_s2 }
  0x66   :  { %714 = vmatmul.mubr.f32.vlgmr.msra.gmra.mrb[4].mxu1 %v1763_v52  ;;  %1229 = vmatprep.subr.bf16.mxu0 %v1265_v62  ;;  %p1241_p0 = scmp.ne.s32.totalorder %s798_s2, %s1240_s8  ;;  %p1246_p2 = scmp.lt.s32.totalorder %s1240_s8, %s1240_s8 }
  0x68   :  { %p1247_p3 = por %p1246_p2, %p1245_p1 }
  0x69   :  { %1231 = vmatpush3.bf16.msra.mxu0 %v1230_v1 }
  0x6a   :  { %p1248_p4 = pnand %p1247_p3, %p1241_p0 }
  0x6c   :  { %1032 = vmatmul.mubr.msk.f32.vlgmr.msra.gmra.mrb[6].mxu0 %vm296_vm1, %v806_v3 }
  0xf7   :  { %v840_v4 = vpop.f32.mrb[0].mxu0 }
  0xf8   :  { %v841_v5 = vpop.f32.mrb[1].mxu0 }
  0xf9   :  { %v875_v6 = vpop.f32.mrb[0].mxu1  ;;  %v842_v52 = vadd.f32 %v841_v5, %v840_v4 }
  0xfa   :  { %v876_v7 = vpop.f32.mrb[1].mxu1 }
  0xfb   :  { %v877_v8 = vadd.f32 %v876_v7, %v875_v6  ;;  %v366_v9 = vadd.f32 %v842_v52, %v805_v43 }
  0xfd   :  { %v436_v11 = vadd.f32 %v877_v8, %v366_v9 }
 0x117   :  { %v910_v12 = vpop.f32.mrb[2].mxu0 }
 0x118   :  { %v911_v13 = vpop.f32.mrb[3].mxu0 }
 0x119   :  { %v945_v14 = vpop.f32.mrb[2].mxu1  ;;  %v912_v15 = vadd.f32 %v911_v13, %v910_v12 }
 0x11a   :  { %v946_v16 = vpop.f32.mrb[3].mxu1 }
 0x11b   :  { %v947_v17 = vadd.f32 %v946_v16, %v945_v14  ;;  %v506_v18 = vadd.f32 %v912_v15, %v436_v11 }
 0x11d   :  { %v576_v19 = vadd.f32 %v947_v17, %v506_v18 }
 0x137   :  { %v980_v20 = vpop.f32.mrb[4].mxu0 }
 0x138   :  { %v981_v21 = vpop.f32.mrb[5].mxu0 }
 0x139   :  { %v1015_v22 = vpop.f32.mrb[4].mxu1  ;;  %v982_v23 = vadd.f32 %v981_v21, %v980_v20 }
 0x13a   :  { %v1016_v24 = vpop.f32.mrb[5].mxu1 }
 0x13b   :  { %v1017_v25 = vadd.f32 %v1016_v24, %v1015_v22  ;;  %v646_v26 = vadd.f32 %v982_v23, %v576_v19 }
 0x13d   :  { %v716_v27 = vadd.f32 %v1017_v25, %v646_v26 }
 0x13f   :  { %v785_v28 = vpop.f32.mrb[6].mxu0 }
 0x140   :  { %v786_v29 = vadd.f32 %v785_v28, %v716_v27  ;;  %v1033_v30 = vpop.f32.mrb[7].mxu0 }
 0x142   :  { %790 = vst.msk [vmem:[#allocation2] sm:$0x3] %vm789_vm2, %v786_v29 }
 0x143   :  { %1251 = shalt.err (!%p1248_p4)
}
 0x144   :  { %s1252_s11 = scalar_lea.hbm %s1935_s3, 32 }
 0x145   :  { %p1253_p5 = scmp.ne.s32.totalorder %s1935_s3, %s1252_s11  ;;  %p1256_p6 = scmp.lt.u32.totalorder %s1252_s11, %s1935_s3 }
 0x147   :  { %p1258_p7 = pnand %p1256_p6, %p1253_p5 }
 0x149   :  { %1261 = shalt.err (!%p1258_p7)
}
 0x14a   :  { %800 = dma.vmem_to_hbm [thread:$0]  %s798_s2, 32, %s1935_s3, [#allocation3]  }
 0x14b   :  { %1262 = dma.done.wait [#allocation3], 32  }
 0x14c   :  { %1263 = vsyncadd [#allocation3], 4294967264 }
 0x14d   :  { %804 = vsyncpa [#allocation3], 1 }

</bundles_post_ra>
